<compile_context>
chip_gen: v5e
topology: v5e:2x2
jax: 0.10.0
libtpu: 0.0.40
codegen_flags: <defaults>
</compile_context>

<pallas_src>
import functools
import math

import jax
import jax.numpy as jnp
from jax import lax
from jax.experimental import pallas as pl
from jax.experimental.pallas import tpu as pltpu


# ----------------------------- fused Pallas kernel -----------------------------------
def _bilstm_kernel(x_ref, mask_ref, wih_ref, whh_ref, b_ref, h0_ref, c0_ref,
                   out_ref, sent_ref, *, T, B, H):
    """Bidirectional LSTM recurrence with packed-sequence (length-mask) semantics.

    x_ref    : [T*B, E]  bf16  embedded tokens, time-major (row = t*B + b)
    mask_ref : [T*B, 2H] f32   iteration-aligned validity mask
                               (cols 0:H -> time t forward, cols H:2H -> time T-1-t bwd)
    wih_ref  : [E, 8H]   bf16  fused input-projection weights, column layout
                               [i_f|i_b|f_f|f_b|o_f|o_b|g_f|g_b]  (each block H wide)
    whh_ref  : [2H, 8H]  bf16  block-diagonal recurrent weights (same column layout)
    b_ref    : [1, 8H]   f32   bias_ih + bias_hh, same column layout
    h0/c0    : [B, 2H]   f32   initial states  [h_fwd | h_bwd]
    out_ref  : [T*B, 2H] f32   padded outputs (exact zeros past each length)
    sent_ref : [B, 2H]   f32   final hidden states [fwd | bwd]
    """
    H2, H4, H6, H8 = 2 * H, 4 * H, 6 * H, 8 * H

    # ---- one lane-dense MXU matmul gives every timestep's gate inputs, both directions
    xproj = jnp.dot(x_ref[...], wih_ref[...],
                    preferred_element_type=jnp.float32) + b_ref[...]        # [T*B, 8H]

    # Hoisted constants (no per-iteration broadcast_in_dim chains).
    col8 = lax.broadcasted_iota(jnp.int32, (B, H8), 1)
    is_fwd_col = (col8 % (2 * H)) < H            # even H-blocks = forward-gate columns
    left_cols = lax.broadcasted_iota(jnp.int32, (B, H2), 1) < H
    mask = mask_ref[...]                         # [T*B, 2H] f32
    whh = whh_ref[...]                           # [2H, 8H] bf16

    h_cat = h0_ref[...]                          # [B, 2H] f32  = [h_f | h_b]
    c_cat = c0_ref[...]

    outs = []
    # Fully unrolled time loop (T small & static); iteration t advances the forward
    # direction at time t and the backward direction at time T-1-t in ONE fused cell.
    for t in range(T):
        xa = xproj[t * B:(t + 1) * B, :]                 # forward-time rows
        xb = xproj[(T - 1 - t) * B:(T - t) * B, :]       # backward-time rows
        x_step = jnp.where(is_fwd_col, xa, xb)           # [B, 8H]

        gates = x_step + jnp.dot(h_cat.astype(jnp.bfloat16), whh,
                                 preferred_element_type=jnp.float32)        # [B, 8H]

        sig = jax.nn.sigmoid(gates[:, 0:H6])             # i|f|o, each [B, 2H]
        i_g = sig[:, 0:H2]
        f_g = sig[:, H2:H4]
        o_g = sig[:, H4:H6]
        g_g = jnp.tanh(gates[:, H6:H8])                  # [B, 2H]

        c_new = f_g * c_cat + i_g * g_g
        h_new = o_g * jnp.tanh(c_new)

        m = mask[t * B:(t + 1) * B, :]                   # [B, 2H] (both directions)
        c_cat = c_cat + m * (c_new - c_cat)              # padded steps freeze the state
        h_cat = h_cat + m * (h_new - h_cat)
        outs.append(m * h_new)                           # exact zeros past each length

    # ---- assemble padded output slab and store lane-dense, once.
    # outs[s][:, 0:H]  -> output time s   (forward)
    # outs[s][:, H:2H] -> output time T-1-s (backward)
    out_slab = jnp.concatenate(
        [jnp.where(left_cols, outs[s], outs[T - 1 - s]) for s in range(T)], axis=0)
    out_ref[...] = out_slab                              # [T*B, 2H]
    sent_ref[...] = h_cat                                # [B, 2H] = [h_n fwd | h_n bwd]


# ----------------------------- wrapper ------------------------------------------------
def rnn_encoder_forward(params, captions, cap_lens, hidden):
    """captions: [B, T] int32, cap_lens: [B] int32, hidden: (h0, c0) each [2, B, H].

    Returns (words_emb [B, 2H, T], sent_emb [B, 2H]) like RNN_ENCODER.forward.
    Assumes max(cap_lens) == T so the padded output length matches pad_packed_sequence.
    """
    B, T = captions.shape
    H = params["whh"].shape[0] // 2          # whh is [2H, 8H]
    h0, c0 = hidden

    # Embedding lookup stays outside the kernel: only the T*B needed rows are gathered.
    ids_tb = captions.T.reshape(T * B).astype(jnp.int32)           # time-major ids
    x = jnp.take(params["emb"], ids_tb, axis=0).astype(jnp.bfloat16)   # [T*B, E]
    # TODO(synk): nn.Dropout(drop_prob) is treated as identity (eval-mode forward);
    #             training-mode stochastic dropout is not implemented.

    # Precompute iteration-aligned length masks (packed-sequence semantics).
    lens = cap_lens.astype(jnp.int32)
    t_idx = jnp.arange(T, dtype=jnp.int32)[:, None]                # [T, 1]
    m_f = (t_idx < lens[None, :]).astype(jnp.float32)              # [T, B]
    m_b = m_f[::-1]                                                # backward = reversed time
    mask = jnp.concatenate(
        [jnp.broadcast_to(m_f.reshape(T * B, 1), (T * B, H)),
         jnp.broadcast_to(m_b.reshape(T * B, 1), (T * B, H))], axis=1)   # [T*B, 2H]

    h0c = jnp.concatenate([h0[0], h0[1]], axis=1).astype(jnp.float32)    # [B, 2H]
    c0c = jnp.concatenate([c0[0], c0[1]], axis=1).astype(jnp.float32)

    vspec = lambda: pl.BlockSpec(memory_space=pltpu.MemorySpace.VMEM)
    out, sent = pl.pallas_call(
        functools.partial(_bilstm_kernel, T=T, B=B, H=H),
        out_shape=(jax.ShapeDtypeStruct((T * B, 2 * H), jnp.float32),
                   jax.ShapeDtypeStruct((B, 2 * H), jnp.float32)),
        in_specs=[vspec() for _ in range(7)],
        out_specs=(vspec(), vspec()),
        compiler_params=pltpu.CompilerParams(vmem_limit_bytes=16 * 1024 * 1024),
    )(x, mask, params["wih"], params["whh"], params["b"], h0c, c0c)

    words_emb = out.reshape(T, B, 2 * H).transpose(1, 2, 0)        # [B, 2H, T]
    sent_emb = sent                                                # [B, 2H]
    return words_emb, sent_emb


# ----------------------------- deterministic parameters -------------------------------
def build_params(key, ntoken, ninput, nhidden_total):
    """PyTorch-equivalent init (embedding ~U(-0.1,0.1); LSTM ~U(-1/sqrt(H), 1/sqrt(H))),
    repacked kernel-ready:
      wih [E, 8H]  = fused, transposed input weights, gate-major/direction-minor columns
                     [i_f|i_b|f_f|f_b|o_f|o_b|g_f|g_b]
      whh [2H, 8H] = block-diagonal recurrent weights in the same column layout
      b   [1, 8H]  = bias_ih + bias_hh, same column layout
    Weights for the MXU are stored in bf16; biases stay f32.
    """
    H = nhidden_total // 2                     # bidirectional => per-direction hidden
    bound = 1.0 / math.sqrt(H)
    ks = jax.random.split(key, 3)
    emb = jax.random.uniform(ks[0], (ntoken, ninput), jnp.float32, -0.1, 0.1)

    def lstm_dir(k):
        k0, k1, k2, k3 = jax.random.split(k, 4)
        w_ih = jax.random.uniform(k0, (4 * H, ninput), jnp.float32, -bound, bound)
        w_hh = jax.random.uniform(k1, (4 * H, H), jnp.float32, -bound, bound)
        b_ih = jax.random.uniform(k2, (4 * H,), jnp.float32, -bound, bound)
        b_hh = jax.random.uniform(k3, (4 * H,), jnp.float32, -bound, bound)
        return w_ih, w_hh, b_ih + b_hh

    wih_f, whh_f, bias_f = lstm_dir(ks[1])
    wih_b, whh_b, bias_b = lstm_dir(ks[2])

    def gate_rows(w):  # PyTorch gate row order: i, f, g, o  (each H rows)
        return w[0:H], w[H:2 * H], w[2 * H:3 * H], w[3 * H:4 * H]

    ii_f, if_f, ig_f, io_f = gate_rows(wih_f)
    ii_b, if_b, ig_b, io_b = gate_rows(wih_b)
    wih = jnp.concatenate([ii_f.T, ii_b.T, if_f.T, if_b.T,
                           io_f.T, io_b.T, ig_f.T, ig_b.T], axis=1)        # [E, 8H]

    hi_f, hf_f, hg_f, ho_f = gate_rows(whh_f)
    hi_b, hf_b, hg_b, ho_b = gate_rows(whh_b)
    Z = jnp.zeros((H, H), jnp.float32)
    whh_top = jnp.concatenate([hi_f.T, Z, hf_f.T, Z, ho_f.T, Z, hg_f.T, Z], axis=1)
    whh_bot = jnp.concatenate([Z, hi_b.T, Z, hf_b.T, Z, ho_b.T, Z, hg_b.T], axis=1)
    whh = jnp.concatenate([whh_top, whh_bot], axis=0)                      # [2H, 8H]

    bi_f, bf_f, bg_f, bo_f = gate_rows(bias_f.reshape(4 * H, 1))
    bi_b, bf_b, bg_b, bo_b = gate_rows(bias_b.reshape(4 * H, 1))
    bias = jnp.concatenate([bi_f, bi_b, bf_f, bf_b,
                            bo_f, bo_b, bg_f, bg_b], axis=0).reshape(1, 8 * H)

    return dict(emb=emb,
                wih=wih.astype(jnp.bfloat16),
                whh=whh.astype(jnp.bfloat16),
                b=bias.astype(jnp.float32))


# ----------------------------- main ----------------------------------------------------
if __name__ == "__main__":
    key = jax.random.PRNGKey(0)
    NTOKEN = 100        # vocabulary size (small; table stays in HBM, gathered outside)
    NINPUT = 128        # word embedding size (small stand-in for default 300)
    NHIDDEN = 128       # module default nhidden=128; bidirectional => H=64 per direction
    B, T = 4, 8
    H = NHIDDEN // 2

    kp, kc = jax.random.split(key)
    params = build_params(kp, NTOKEN, NINPUT, NHIDDEN)
    captions = jax.random.randint(kc, (B, T), 0, NTOKEN, dtype=jnp.int32)
    cap_lens = jnp.array([T, 6, 5, 3], dtype=jnp.int32)   # max == T (matches pad_packed)
    # init_hidden(bsz): zeros of shape [nlayers * num_directions, B, H]
    h0 = jnp.zeros((2, B, H), jnp.float32)
    c0 = jnp.zeros((2, B, H), jnp.float32)

    fwd = jax.jit(rnn_encoder_forward)
    words_emb, sent_emb = fwd(params, captions, cap_lens, (h0, c0))
    jax.block_until_ready((words_emb, sent_emb))

    assert words_emb.shape == (B, NHIDDEN, T), words_emb.shape
    assert sent_emb.shape == (B, NHIDDEN), sent_emb.shape
    assert bool(jnp.all(jnp.isfinite(words_emb))) and bool(jnp.all(jnp.isfinite(sent_emb)))
    # pack_padded/pad_packed semantics: outputs past each caption length are exactly zero
    t_idx = jnp.arange(T)[None, None, :]
    pad_mask = t_idx >= cap_lens[:, None, None]
    assert bool(jnp.all(jnp.where(pad_mask, words_emb, 0.0) == 0.0))

    print("KERNEL_OK")
</pallas_src>

<mosaic_0001>
module attributes {stable_mosaic.version = 11 : i64} {
  func.func @_bilstm_kernel(%arg0: memref<32x128xbf16, #tpu.memory_space<vmem>>, %arg1: memref<32x128xf32, #tpu.memory_space<vmem>>, %arg2: memref<128x512xbf16, #tpu.memory_space<vmem>>, %arg3: memref<128x512xbf16, #tpu.memory_space<vmem>>, %arg4: memref<1x512xf32, #tpu.memory_space<vmem>>, %arg5: memref<4x128xf32, #tpu.memory_space<vmem>>, %arg6: memref<4x128xf32, #tpu.memory_space<vmem>>, %arg7: memref<32x128xf32, #tpu.memory_space<vmem>>, %arg8: memref<4x128xf32, #tpu.memory_space<vmem>>) attributes {dimension_semantics = [], scalar_prefetch = 0 : i64, scratch_operands = 0 : i64, tpu.core_type = #tpu.core_type<tc>} {
    %c0 = arith.constant 0 : index
    %c0_0 = arith.constant 0 : index
    %0 = vector.load %arg0[%c0, %c0_0] : memref<32x128xbf16, #tpu.memory_space<vmem>>, vector<32x128xbf16>
    %c0_1 = arith.constant 0 : index
    %c0_2 = arith.constant 0 : index
    %1 = vector.load %arg2[%c0_1, %c0_2] : memref<128x512xbf16, #tpu.memory_space<vmem>>, vector<128x512xbf16>
    %cst = arith.constant dense<0.000000e+00> : vector<32x512xf32>
    %2 = tpu.matmul %0, %1, %cst {dimension_numbers = #tpu.dot_dimension_numbers<[1], [0], [0], [1], [0, 0, 1, 1], [], []>} : vector<32x128xbf16>, vector<128x512xbf16>, vector<32x512xf32> -> vector<32x512xf32>
    %c0_3 = arith.constant 0 : index
    %c0_4 = arith.constant 0 : index
    %3 = vector.load %arg4[%c0_3, %c0_4] : memref<1x512xf32, #tpu.memory_space<vmem>>, vector<1x512xf32>
    %4 = vector.broadcast %3 : vector<1x512xf32> to vector<32x512xf32>
    %5 = arith.addf %2, %4 : vector<32x512xf32>
    %6 = tpu.iota {dimensions = array<i32: 1>} : vector<4x512xi32>
    %c128_i32 = arith.constant 128 : i32
    %c0_i32 = arith.constant 0 : i32
    %7 = arith.cmpi eq, %c128_i32, %c0_i32 : i32
    %c1_i32 = arith.constant 1 : i32
    %8 = arith.select %7, %c1_i32, %c128_i32 : i32
    %9 = vector.broadcast %8 : i32 to vector<4x512xi32>
    %10 = arith.remsi %6, %9 : vector<4x512xi32>
    %c0_i32_5 = arith.constant 0 : i32
    %11 = vector.broadcast %c0_i32_5 : i32 to vector<4x512xi32>
    %12 = arith.cmpi ne, %10, %11 : vector<4x512xi32>
    %c0_i32_6 = arith.constant 0 : i32
    %13 = vector.broadcast %c0_i32_6 : i32 to vector<4x512xi32>
    %14 = arith.cmpi slt, %10, %13 : vector<4x512xi32>
    %c0_i32_7 = arith.constant 0 : i32
    %15 = arith.cmpi slt, %8, %c0_i32_7 : i32
    %16 = vector.broadcast %15 : i1 to vector<4x512xi1>
    %17 = vector.broadcast %16 : vector<4x512xi1> to vector<4x512xi1>
    %18 = arith.xori %14, %17 : vector<4x512xi1>
    %19 = arith.andi %18, %12 : vector<4x512xi1>
    %20 = vector.broadcast %8 : i32 to vector<4x512xi32>
    %21 = arith.addi %10, %20 : vector<4x512xi32>
    %22 = arith.select %19, %21, %10 : vector<4x512xi1>, vector<4x512xi32>
    %c64_i32 = arith.constant 64 : i32
    %23 = vector.broadcast %c64_i32 : i32 to vector<4x512xi32>
    %24 = arith.cmpi slt, %22, %23 : vector<4x512xi32>
    %25 = tpu.iota {dimensions = array<i32: 1>} : vector<4x128xi32>
    %c64_i32_8 = arith.constant 64 : i32
    %26 = vector.broadcast %c64_i32_8 : i32 to vector<4x128xi32>
    %27 = arith.cmpi slt, %25, %26 : vector<4x128xi32>
    %c0_9 = arith.constant 0 : index
    %c0_10 = arith.constant 0 : index
    %28 = vector.load %arg1[%c0_9, %c0_10] : memref<32x128xf32, #tpu.memory_space<vmem>>, vector<32x128xf32>
    %c0_11 = arith.constant 0 : index
    %c0_12 = arith.constant 0 : index
    %29 = vector.load %arg3[%c0_11, %c0_12] : memref<128x512xbf16, #tpu.memory_space<vmem>>, vector<128x512xbf16>
    %c0_13 = arith.constant 0 : index
    %c0_14 = arith.constant 0 : index
    %30 = vector.load %arg5[%c0_13, %c0_14] : memref<4x128xf32, #tpu.memory_space<vmem>>, vector<4x128xf32>
    %c0_15 = arith.constant 0 : index
    %c0_16 = arith.constant 0 : index
    %31 = vector.load %arg6[%c0_15, %c0_16] : memref<4x128xf32, #tpu.memory_space<vmem>>, vector<4x128xf32>
    %32 = vector.extract_strided_slice %5 {offsets = [0, 0], sizes = [4, 512], strides = [1, 1]} : vector<32x512xf32> to vector<4x512xf32>
    %33 = vector.extract_strided_slice %5 {offsets = [28, 0], sizes = [4, 512], strides = [1, 1]} : vector<32x512xf32> to vector<4x512xf32>
    %34 = arith.select %24, %32, %33 : vector<4x512xi1>, vector<4x512xf32>
    %35 = arith.truncf %30 : vector<4x128xf32> to vector<4x128xbf16>
    %cst_17 = arith.constant dense<0.000000e+00> : vector<4x512xf32>
    %36 = tpu.matmul %35, %29, %cst_17 {dimension_numbers = #tpu.dot_dimension_numbers<[1], [0], [0], [1], [0, 0, 1, 1], [], []>} : vector<4x128xbf16>, vector<128x512xbf16>, vector<4x512xf32> -> vector<4x512xf32>
    %37 = arith.addf %34, %36 : vector<4x512xf32>
    %38 = vector.extract_strided_slice %37 {offsets = [0, 0], sizes = [4, 384], strides = [1, 1]} : vector<4x512xf32> to vector<4x384xf32>
    %39 = arith.negf %38 : vector<4x384xf32>
    %40 = math.exp %39 : vector<4x384xf32>
    %cst_18 = arith.constant 1.000000e+00 : f32
    %41 = vector.broadcast %cst_18 : f32 to vector<4x384xf32>
    %42 = arith.addf %41, %40 : vector<4x384xf32>
    %43 = arith.divf %41, %42 : vector<4x384xf32>
    %44 = vector.extract_strided_slice %43 {offsets = [0, 0], sizes = [4, 128], strides = [1, 1]} : vector<4x384xf32> to vector<4x128xf32>
    %45 = vector.extract_strided_slice %43 {offsets = [0, 128], sizes = [4, 128], strides = [1, 1]} : vector<4x384xf32> to vector<4x128xf32>
    %46 = vector.extract_strided_slice %43 {offsets = [0, 256], sizes = [4, 128], strides = [1, 1]} : vector<4x384xf32> to vector<4x128xf32>
    %47 = vector.extract_strided_slice %37 {offsets = [0, 384], sizes = [4, 128], strides = [1, 1]} : vector<4x512xf32> to vector<4x128xf32>
    %48 = math.tanh %47 : vector<4x128xf32>
    %49 = arith.mulf %45, %31 : vector<4x128xf32>
    %50 = arith.mulf %44, %48 : vector<4x128xf32>
    %51 = arith.addf %49, %50 : vector<4x128xf32>
    %52 = math.tanh %51 : vector<4x128xf32>
    %53 = arith.mulf %46, %52 : vector<4x128xf32>
    %54 = vector.extract_strided_slice %28 {offsets = [0, 0], sizes = [4, 128], strides = [1, 1]} : vector<32x128xf32> to vector<4x128xf32>
    %55 = arith.subf %51, %31 : vector<4x128xf32>
    %56 = arith.mulf %54, %55 : vector<4x128xf32>
    %57 = arith.addf %31, %56 : vector<4x128xf32>
    %58 = arith.subf %53, %30 : vector<4x128xf32>
    %59 = arith.mulf %54, %58 : vector<4x128xf32>
    %60 = arith.addf %30, %59 : vector<4x128xf32>
    %61 = arith.mulf %54, %53 : vector<4x128xf32>
    %62 = vector.extract_strided_slice %5 {offsets = [4, 0], sizes = [4, 512], strides = [1, 1]} : vector<32x512xf32> to vector<4x512xf32>
    %63 = vector.extract_strided_slice %5 {offsets = [24, 0], sizes = [4, 512], strides = [1, 1]} : vector<32x512xf32> to vector<4x512xf32>
    %64 = arith.select %24, %62, %63 : vector<4x512xi1>, vector<4x512xf32>
    %65 = arith.truncf %60 : vector<4x128xf32> to vector<4x128xbf16>
    %cst_19 = arith.constant dense<0.000000e+00> : vector<4x512xf32>
    %66 = tpu.matmul %65, %29, %cst_19 {dimension_numbers = #tpu.dot_dimension_numbers<[1], [0], [0], [1], [0, 0, 1, 1], [], []>} : vector<4x128xbf16>, vector<128x512xbf16>, vector<4x512xf32> -> vector<4x512xf32>
    %67 = arith.addf %64, %66 : vector<4x512xf32>
    %68 = vector.extract_strided_slice %67 {offsets = [0, 0], sizes = [4, 384], strides = [1, 1]} : vector<4x512xf32> to vector<4x384xf32>
    %69 = arith.negf %68 : vector<4x384xf32>
    %70 = math.exp %69 : vector<4x384xf32>
    %cst_20 = arith.constant 1.000000e+00 : f32
    %71 = vector.broadcast %cst_20 : f32 to vector<4x384xf32>
    %72 = arith.addf %71, %70 : vector<4x384xf32>
    %73 = arith.divf %71, %72 : vector<4x384xf32>
    %74 = vector.extract_strided_slice %73 {offsets = [0, 0], sizes = [4, 128], strides = [1, 1]} : vector<4x384xf32> to vector<4x128xf32>
    %75 = vector.extract_strided_slice %73 {offsets = [0, 128], sizes = [4, 128], strides = [1, 1]} : vector<4x384xf32> to vector<4x128xf32>
    %76 = vector.extract_strided_slice %73 {offsets = [0, 256], sizes = [4, 128], strides = [1, 1]} : vector<4x384xf32> to vector<4x128xf32>
    %77 = vector.extract_strided_slice %67 {offsets = [0, 384], sizes = [4, 128], strides = [1, 1]} : vector<4x512xf32> to vector<4x128xf32>
    %78 = math.tanh %77 : vector<4x128xf32>
    %79 = arith.mulf %75, %57 : vector<4x128xf32>
    %80 = arith.mulf %74, %78 : vector<4x128xf32>
    %81 = arith.addf %79, %80 : vector<4x128xf32>
    %82 = math.tanh %81 : vector<4x128xf32>
    %83 = arith.mulf %76, %82 : vector<4x128xf32>
    %84 = vector.extract_strided_slice %28 {offsets = [4, 0], sizes = [4, 128], strides = [1, 1]} : vector<32x128xf32> to vector<4x128xf32>
    %85 = arith.subf %81, %57 : vector<4x128xf32>
    %86 = arith.mulf %84, %85 : vector<4x128xf32>
    %87 = arith.addf %57, %86 : vector<4x128xf32>
    %88 = arith.subf %83, %60 : vector<4x128xf32>
    %89 = arith.mulf %84, %88 : vector<4x128xf32>
    %90 = arith.addf %60, %89 : vector<4x128xf32>
    %91 = arith.mulf %84, %83 : vector<4x128xf32>
    %92 = vector.extract_strided_slice %5 {offsets = [8, 0], sizes = [4, 512], strides = [1, 1]} : vector<32x512xf32> to vector<4x512xf32>
    %93 = vector.extract_strided_slice %5 {offsets = [20, 0], sizes = [4, 512], strides = [1, 1]} : vector<32x512xf32> to vector<4x512xf32>
    %94 = arith.select %24, %92, %93 : vector<4x512xi1>, vector<4x512xf32>
    %95 = arith.truncf %90 : vector<4x128xf32> to vector<4x128xbf16>
    %cst_21 = arith.constant dense<0.000000e+00> : vector<4x512xf32>
    %96 = tpu.matmul %95, %29, %cst_21 {dimension_numbers = #tpu.dot_dimension_numbers<[1], [0], [0], [1], [0, 0, 1, 1], [], []>} : vector<4x128xbf16>, vector<128x512xbf16>, vector<4x512xf32> -> vector<4x512xf32>
    %97 = arith.addf %94, %96 : vector<4x512xf32>
    %98 = vector.extract_strided_slice %97 {offsets = [0, 0], sizes = [4, 384], strides = [1, 1]} : vector<4x512xf32> to vector<4x384xf32>
    %99 = arith.negf %98 : vector<4x384xf32>
    %100 = math.exp %99 : vector<4x384xf32>
    %cst_22 = arith.constant 1.000000e+00 : f32
    %101 = vector.broadcast %cst_22 : f32 to vector<4x384xf32>
    %102 = arith.addf %101, %100 : vector<4x384xf32>
    %103 = arith.divf %101, %102 : vector<4x384xf32>
    %104 = vector.extract_strided_slice %103 {offsets = [0, 0], sizes = [4, 128], strides = [1, 1]} : vector<4x384xf32> to vector<4x128xf32>
    %105 = vector.extract_strided_slice %103 {offsets = [0, 128], sizes = [4, 128], strides = [1, 1]} : vector<4x384xf32> to vector<4x128xf32>
    %106 = vector.extract_strided_slice %103 {offsets = [0, 256], sizes = [4, 128], strides = [1, 1]} : vector<4x384xf32> to vector<4x128xf32>
    %107 = vector.extract_strided_slice %97 {offsets = [0, 384], sizes = [4, 128], strides = [1, 1]} : vector<4x512xf32> to vector<4x128xf32>
    %108 = math.tanh %107 : vector<4x128xf32>
    %109 = arith.mulf %105, %87 : vector<4x128xf32>
    %110 = arith.mulf %104, %108 : vector<4x128xf32>
    %111 = arith.addf %109, %110 : vector<4x128xf32>
    %112 = math.tanh %111 : vector<4x128xf32>
    %113 = arith.mulf %106, %112 : vector<4x128xf32>
    %114 = vector.extract_strided_slice %28 {offsets = [8, 0], sizes = [4, 128], strides = [1, 1]} : vector<32x128xf32> to vector<4x128xf32>
    %115 = arith.subf %111, %87 : vector<4x128xf32>
    %116 = arith.mulf %114, %115 : vector<4x128xf32>
    %117 = arith.addf %87, %116 : vector<4x128xf32>
    %118 = arith.subf %113, %90 : vector<4x128xf32>
    %119 = arith.mulf %114, %118 : vector<4x128xf32>
    %120 = arith.addf %90, %119 : vector<4x128xf32>
    %121 = arith.mulf %114, %113 : vector<4x128xf32>
    %122 = vector.extract_strided_slice %5 {offsets = [12, 0], sizes = [4, 512], strides = [1, 1]} : vector<32x512xf32> to vector<4x512xf32>
    %123 = vector.extract_strided_slice %5 {offsets = [16, 0], sizes = [4, 512], strides = [1, 1]} : vector<32x512xf32> to vector<4x512xf32>
    %124 = arith.select %24, %122, %123 : vector<4x512xi1>, vector<4x512xf32>
    %125 = arith.truncf %120 : vector<4x128xf32> to vector<4x128xbf16>
    %cst_23 = arith.constant dense<0.000000e+00> : vector<4x512xf32>
    %126 = tpu.matmul %125, %29, %cst_23 {dimension_numbers = #tpu.dot_dimension_numbers<[1], [0], [0], [1], [0, 0, 1, 1], [], []>} : vector<4x128xbf16>, vector<128x512xbf16>, vector<4x512xf32> -> vector<4x512xf32>
    %127 = arith.addf %124, %126 : vector<4x512xf32>
    %128 = vector.extract_strided_slice %127 {offsets = [0, 0], sizes = [4, 384], strides = [1, 1]} : vector<4x512xf32> to vector<4x384xf32>
    %129 = arith.negf %128 : vector<4x384xf32>
    %130 = math.exp %129 : vector<4x384xf32>
    %cst_24 = arith.constant 1.000000e+00 : f32
    %131 = vector.broadcast %cst_24 : f32 to vector<4x384xf32>
    %132 = arith.addf %131, %130 : vector<4x384xf32>
    %133 = arith.divf %131, %132 : vector<4x384xf32>
    %134 = vector.extract_strided_slice %133 {offsets = [0, 0], sizes = [4, 128], strides = [1, 1]} : vector<4x384xf32> to vector<4x128xf32>
    %135 = vector.extract_strided_slice %133 {offsets = [0, 128], sizes = [4, 128], strides = [1, 1]} : vector<4x384xf32> to vector<4x128xf32>
    %136 = vector.extract_strided_slice %133 {offsets = [0, 256], sizes = [4, 128], strides = [1, 1]} : vector<4x384xf32> to vector<4x128xf32>
    %137 = vector.extract_strided_slice %127 {offsets = [0, 384], sizes = [4, 128], strides = [1, 1]} : vector<4x512xf32> to vector<4x128xf32>
    %138 = math.tanh %137 : vector<4x128xf32>
    %139 = arith.mulf %135, %117 : vector<4x128xf32>
    %140 = arith.mulf %134, %138 : vector<4x128xf32>
    %141 = arith.addf %139, %140 : vector<4x128xf32>
    %142 = math.tanh %141 : vector<4x128xf32>
    %143 = arith.mulf %136, %142 : vector<4x128xf32>
    %144 = vector.extract_strided_slice %28 {offsets = [12, 0], sizes = [4, 128], strides = [1, 1]} : vector<32x128xf32> to vector<4x128xf32>
    %145 = arith.subf %141, %117 : vector<4x128xf32>
    %146 = arith.mulf %144, %145 : vector<4x128xf32>
    %147 = arith.addf %117, %146 : vector<4x128xf32>
    %148 = arith.subf %143, %120 : vector<4x128xf32>
    %149 = arith.mulf %144, %148 : vector<4x128xf32>
    %150 = arith.addf %120, %149 : vector<4x128xf32>
    %151 = arith.mulf %144, %143 : vector<4x128xf32>
    %152 = vector.extract_strided_slice %5 {offsets = [16, 0], sizes = [4, 512], strides = [1, 1]} : vector<32x512xf32> to vector<4x512xf32>
    %153 = vector.extract_strided_slice %5 {offsets = [12, 0], sizes = [4, 512], strides = [1, 1]} : vector<32x512xf32> to vector<4x512xf32>
    %154 = arith.select %24, %152, %153 : vector<4x512xi1>, vector<4x512xf32>
    %155 = arith.truncf %150 : vector<4x128xf32> to vector<4x128xbf16>
    %cst_25 = arith.constant dense<0.000000e+00> : vector<4x512xf32>
    %156 = tpu.matmul %155, %29, %cst_25 {dimension_numbers = #tpu.dot_dimension_numbers<[1], [0], [0], [1], [0, 0, 1, 1], [], []>} : vector<4x128xbf16>, vector<128x512xbf16>, vector<4x512xf32> -> vector<4x512xf32>
    %157 = arith.addf %154, %156 : vector<4x512xf32>
    %158 = vector.extract_strided_slice %157 {offsets = [0, 0], sizes = [4, 384], strides = [1, 1]} : vector<4x512xf32> to vector<4x384xf32>
    %159 = arith.negf %158 : vector<4x384xf32>
    %160 = math.exp %159 : vector<4x384xf32>
    %cst_26 = arith.constant 1.000000e+00 : f32
    %161 = vector.broadcast %cst_26 : f32 to vector<4x384xf32>
    %162 = arith.addf %161, %160 : vector<4x384xf32>
    %163 = arith.divf %161, %162 : vector<4x384xf32>
    %164 = vector.extract_strided_slice %163 {offsets = [0, 0], sizes = [4, 128], strides = [1, 1]} : vector<4x384xf32> to vector<4x128xf32>
    %165 = vector.extract_strided_slice %163 {offsets = [0, 128], sizes = [4, 128], strides = [1, 1]} : vector<4x384xf32> to vector<4x128xf32>
    %166 = vector.extract_strided_slice %163 {offsets = [0, 256], sizes = [4, 128], strides = [1, 1]} : vector<4x384xf32> to vector<4x128xf32>
    %167 = vector.extract_strided_slice %157 {offsets = [0, 384], sizes = [4, 128], strides = [1, 1]} : vector<4x512xf32> to vector<4x128xf32>
    %168 = math.tanh %167 : vector<4x128xf32>
    %169 = arith.mulf %165, %147 : vector<4x128xf32>
    %170 = arith.mulf %164, %168 : vector<4x128xf32>
    %171 = arith.addf %169, %170 : vector<4x128xf32>
    %172 = math.tanh %171 : vector<4x128xf32>
    %173 = arith.mulf %166, %172 : vector<4x128xf32>
    %174 = vector.extract_strided_slice %28 {offsets = [16, 0], sizes = [4, 128], strides = [1, 1]} : vector<32x128xf32> to vector<4x128xf32>
    %175 = arith.subf %171, %147 : vector<4x128xf32>
    %176 = arith.mulf %174, %175 : vector<4x128xf32>
    %177 = arith.addf %147, %176 : vector<4x128xf32>
    %178 = arith.subf %173, %150 : vector<4x128xf32>
    %179 = arith.mulf %174, %178 : vector<4x128xf32>
    %180 = arith.addf %150, %179 : vector<4x128xf32>
    %181 = arith.mulf %174, %173 : vector<4x128xf32>
    %182 = vector.extract_strided_slice %5 {offsets = [20, 0], sizes = [4, 512], strides = [1, 1]} : vector<32x512xf32> to vector<4x512xf32>
    %183 = vector.extract_strided_slice %5 {offsets = [8, 0], sizes = [4, 512], strides = [1, 1]} : vector<32x512xf32> to vector<4x512xf32>
    %184 = arith.select %24, %182, %183 : vector<4x512xi1>, vector<4x512xf32>
    %185 = arith.truncf %180 : vector<4x128xf32> to vector<4x128xbf16>
    %cst_27 = arith.constant dense<0.000000e+00> : vector<4x512xf32>
    %186 = tpu.matmul %185, %29, %cst_27 {dimension_numbers = #tpu.dot_dimension_numbers<[1], [0], [0], [1], [0, 0, 1, 1], [], []>} : vector<4x128xbf16>, vector<128x512xbf16>, vector<4x512xf32> -> vector<4x512xf32>
    %187 = arith.addf %184, %186 : vector<4x512xf32>
    %188 = vector.extract_strided_slice %187 {offsets = [0, 0], sizes = [4, 384], strides = [1, 1]} : vector<4x512xf32> to vector<4x384xf32>
    %189 = arith.negf %188 : vector<4x384xf32>
    %190 = math.exp %189 : vector<4x384xf32>
    %cst_28 = arith.constant 1.000000e+00 : f32
    %191 = vector.broadcast %cst_28 : f32 to vector<4x384xf32>
    %192 = arith.addf %191, %190 : vector<4x384xf32>
    %193 = arith.divf %191, %192 : vector<4x384xf32>
    %194 = vector.extract_strided_slice %193 {offsets = [0, 0], sizes = [4, 128], strides = [1, 1]} : vector<4x384xf32> to vector<4x128xf32>
    %195 = vector.extract_strided_slice %193 {offsets = [0, 128], sizes = [4, 128], strides = [1, 1]} : vector<4x384xf32> to vector<4x128xf32>
    %196 = vector.extract_strided_slice %193 {offsets = [0, 256], sizes = [4, 128], strides = [1, 1]} : vector<4x384xf32> to vector<4x128xf32>
    %197 = vector.extract_strided_slice %187 {offsets = [0, 384], sizes = [4, 128], strides = [1, 1]} : vector<4x512xf32> to vector<4x128xf32>
    %198 = math.tanh %197 : vector<4x128xf32>
    %199 = arith.mulf %195, %177 : vector<4x128xf32>
    %200 = arith.mulf %194, %198 : vector<4x128xf32>
    %201 = arith.addf %199, %200 : vector<4x128xf32>
    %202 = math.tanh %201 : vector<4x128xf32>
    %203 = arith.mulf %196, %202 : vector<4x128xf32>
    %204 = vector.extract_strided_slice %28 {offsets = [20, 0], sizes = [4, 128], strides = [1, 1]} : vector<32x128xf32> to vector<4x128xf32>
    %205 = arith.subf %201, %177 : vector<4x128xf32>
    %206 = arith.mulf %204, %205 : vector<4x128xf32>
    %207 = arith.addf %177, %206 : vector<4x128xf32>
    %208 = arith.subf %203, %180 : vector<4x128xf32>
    %209 = arith.mulf %204, %208 : vector<4x128xf32>
    %210 = arith.addf %180, %209 : vector<4x128xf32>
    %211 = arith.mulf %204, %203 : vector<4x128xf32>
    %212 = vector.extract_strided_slice %5 {offsets = [24, 0], sizes = [4, 512], strides = [1, 1]} : vector<32x512xf32> to vector<4x512xf32>
    %213 = vector.extract_strided_slice %5 {offsets = [4, 0], sizes = [4, 512], strides = [1, 1]} : vector<32x512xf32> to vector<4x512xf32>
    %214 = arith.select %24, %212, %213 : vector<4x512xi1>, vector<4x512xf32>
    %215 = arith.truncf %210 : vector<4x128xf32> to vector<4x128xbf16>
    %cst_29 = arith.constant dense<0.000000e+00> : vector<4x512xf32>
    %216 = tpu.matmul %215, %29, %cst_29 {dimension_numbers = #tpu.dot_dimension_numbers<[1], [0], [0], [1], [0, 0, 1, 1], [], []>} : vector<4x128xbf16>, vector<128x512xbf16>, vector<4x512xf32> -> vector<4x512xf32>
    %217 = arith.addf %214, %216 : vector<4x512xf32>
    %218 = vector.extract_strided_slice %217 {offsets = [0, 0], sizes = [4, 384], strides = [1, 1]} : vector<4x512xf32> to vector<4x384xf32>
    %219 = arith.negf %218 : vector<4x384xf32>
    %220 = math.exp %219 : vector<4x384xf32>
    %cst_30 = arith.constant 1.000000e+00 : f32
    %221 = vector.broadcast %cst_30 : f32 to vector<4x384xf32>
    %222 = arith.addf %221, %220 : vector<4x384xf32>
    %223 = arith.divf %221, %222 : vector<4x384xf32>
    %224 = vector.extract_strided_slice %223 {offsets = [0, 0], sizes = [4, 128], strides = [1, 1]} : vector<4x384xf32> to vector<4x128xf32>
    %225 = vector.extract_strided_slice %223 {offsets = [0, 128], sizes = [4, 128], strides = [1, 1]} : vector<4x384xf32> to vector<4x128xf32>
    %226 = vector.extract_strided_slice %223 {offsets = [0, 256], sizes = [4, 128], strides = [1, 1]} : vector<4x384xf32> to vector<4x128xf32>
    %227 = vector.extract_strided_slice %217 {offsets = [0, 384], sizes = [4, 128], strides = [1, 1]} : vector<4x512xf32> to vector<4x128xf32>
    %228 = math.tanh %227 : vector<4x128xf32>
    %229 = arith.mulf %225, %207 : vector<4x128xf32>
    %230 = arith.mulf %224, %228 : vector<4x128xf32>
    %231 = arith.addf %229, %230 : vector<4x128xf32>
    %232 = math.tanh %231 : vector<4x128xf32>
    %233 = arith.mulf %226, %232 : vector<4x128xf32>
    %234 = vector.extract_strided_slice %28 {offsets = [24, 0], sizes = [4, 128], strides = [1, 1]} : vector<32x128xf32> to vector<4x128xf32>
    %235 = arith.subf %231, %207 : vector<4x128xf32>
    %236 = arith.mulf %234, %235 : vector<4x128xf32>
    %237 = arith.addf %207, %236 : vector<4x128xf32>
    %238 = arith.subf %233, %210 : vector<4x128xf32>
    %239 = arith.mulf %234, %238 : vector<4x128xf32>
    %240 = arith.addf %210, %239 : vector<4x128xf32>
    %241 = arith.mulf %234, %233 : vector<4x128xf32>
    %242 = vector.extract_strided_slice %5 {offsets = [28, 0], sizes = [4, 512], strides = [1, 1]} : vector<32x512xf32> to vector<4x512xf32>
    %243 = vector.extract_strided_slice %5 {offsets = [0, 0], sizes = [4, 512], strides = [1, 1]} : vector<32x512xf32> to vector<4x512xf32>
    %244 = arith.select %24, %242, %243 : vector<4x512xi1>, vector<4x512xf32>
    %245 = arith.truncf %240 : vector<4x128xf32> to vector<4x128xbf16>
    %cst_31 = arith.constant dense<0.000000e+00> : vector<4x512xf32>
    %246 = tpu.matmul %245, %29, %cst_31 {dimension_numbers = #tpu.dot_dimension_numbers<[1], [0], [0], [1], [0, 0, 1, 1], [], []>} : vector<4x128xbf16>, vector<128x512xbf16>, vector<4x512xf32> -> vector<4x512xf32>
    %247 = arith.addf %244, %246 : vector<4x512xf32>
    %248 = vector.extract_strided_slice %247 {offsets = [0, 0], sizes = [4, 384], strides = [1, 1]} : vector<4x512xf32> to vector<4x384xf32>
    %249 = arith.negf %248 : vector<4x384xf32>
    %250 = math.exp %249 : vector<4x384xf32>
    %cst_32 = arith.constant 1.000000e+00 : f32
    %251 = vector.broadcast %cst_32 : f32 to vector<4x384xf32>
    %252 = arith.addf %251, %250 : vector<4x384xf32>
    %253 = arith.divf %251, %252 : vector<4x384xf32>
    %254 = vector.extract_strided_slice %253 {offsets = [0, 0], sizes = [4, 128], strides = [1, 1]} : vector<4x384xf32> to vector<4x128xf32>
    %255 = vector.extract_strided_slice %253 {offsets = [0, 128], sizes = [4, 128], strides = [1, 1]} : vector<4x384xf32> to vector<4x128xf32>
    %256 = vector.extract_strided_slice %253 {offsets = [0, 256], sizes = [4, 128], strides = [1, 1]} : vector<4x384xf32> to vector<4x128xf32>
    %257 = vector.extract_strided_slice %247 {offsets = [0, 384], sizes = [4, 128], strides = [1, 1]} : vector<4x512xf32> to vector<4x128xf32>
    %258 = math.tanh %257 : vector<4x128xf32>
    %259 = arith.mulf %255, %237 : vector<4x128xf32>
    %260 = arith.mulf %254, %258 : vector<4x128xf32>
    %261 = arith.addf %259, %260 : vector<4x128xf32>
    %262 = math.tanh %261 : vector<4x128xf32>
    %263 = arith.mulf %256, %262 : vector<4x128xf32>
    %264 = vector.extract_strided_slice %28 {offsets = [28, 0], sizes = [4, 128], strides = [1, 1]} : vector<32x128xf32> to vector<4x128xf32>
    %265 = arith.subf %263, %240 : vector<4x128xf32>
    %266 = arith.mulf %264, %265 : vector<4x128xf32>
    %267 = arith.addf %240, %266 : vector<4x128xf32>
    %268 = arith.mulf %264, %263 : vector<4x128xf32>
    %269 = arith.select %27, %61, %268 : vector<4x128xi1>, vector<4x128xf32>
    %270 = arith.select %27, %91, %241 : vector<4x128xi1>, vector<4x128xf32>
    %271 = arith.select %27, %121, %211 : vector<4x128xi1>, vector<4x128xf32>
    %272 = arith.select %27, %151, %181 : vector<4x128xi1>, vector<4x128xf32>
    %273 = arith.select %27, %181, %151 : vector<4x128xi1>, vector<4x128xf32>
    %274 = arith.select %27, %211, %121 : vector<4x128xi1>, vector<4x128xf32>
    %275 = arith.select %27, %241, %91 : vector<4x128xi1>, vector<4x128xf32>
    %276 = arith.select %27, %268, %61 : vector<4x128xi1>, vector<4x128xf32>
    %277 = tpu.concatenate %269, %270, %271, %272, %273, %274, %275, %276 in 0 : vector<4x128xf32>, vector<4x128xf32>, vector<4x128xf32>, vector<4x128xf32>, vector<4x128xf32>, vector<4x128xf32>, vector<4x128xf32>, vector<4x128xf32> -> vector<32x128xf32>
    %c0_33 = arith.constant 0 : index
    %c0_34 = arith.constant 0 : index
    %278 = vector.load %arg7[%c0_33, %c0_34] : memref<32x128xf32, #tpu.memory_space<vmem>>, vector<32x128xf32>
    tpu.vector_store %arg7[%c0_33, %c0_34], %277 {strides = array<i32>} : memref<32x128xf32, #tpu.memory_space<vmem>>, vector<32x128xf32>,
    %c0_35 = arith.constant 0 : index
    %c0_36 = arith.constant 0 : index
    %279 = vector.load %arg8[%c0_35, %c0_36] : memref<4x128xf32, #tpu.memory_space<vmem>>, vector<4x128xf32>
    tpu.vector_store %arg8[%c0_35, %c0_36], %267 {strides = array<i32>} : memref<4x128xf32, #tpu.memory_space<vmem>>, vector<4x128xf32>,
    return
  }
}

</mosaic_0001>

<bundles_post_ra>
// kernel: rnn_encoder_forward.1
= control target key start
LH: loop header
LB: loop body
LE: loop exit
PB: predicated region body
PF: predicated region fallthrough
CT: control target
= control target key end

     0   :  { %14 = vsyncpa [#allocation3], 0  ;;  %s3240_s0 = inlined_call_operand.vmem [shape: bf16[32,128], index: 0, kind: input, shape index: {}]   ;;  %s3241_s1 = inlined_call_operand.vmem [shape: f32[32,128], index: 1, kind: input, shape index: {}]   ;;  %s3242_s2 = inlined_call_operand.vmem [shape: bf16[128,512], index: 2, kind: input, shape index: {}]   ;;  %s3243_s3 = inlined_call_operand.hbm [shape: bf16[128,512], index: 3, kind: input, shape index: {}]   ;;  %s3244_s4 = inlined_call_operand.vmem [shape: f32[1,512], index: 4, kind: input, shape index: {}]   ;;  %s3245_s5 = inlined_call_operand.vmem [shape: f32[4,128], index: 5, kind: input, shape index: {}]   ;;  %s3246_s6 = inlined_call_operand.vmem [shape: f32[4,128], index: 6, kind: input, shape index: {}]   ;;  %s3247_s7 = inlined_call_operand.vmem [shape: f32[32,128], index: 7, kind: output, shape index: {0}]   ;;  %s3248_s8 = inlined_call_operand.hbm [shape: f32[4,128], index: 8, kind: output, shape index: {1}]  }
   0x1   :  { %15 = vsyncpa [#allocation4], 0  ;;  %s26_s29 = sshll.u32 %s3243_s3, 4  ;;  %s2367_s30 = smov [#allocation2]   ;;  %s27_s29 = int_to_ptr.hbm [resolvable:$true] %s26_s29 }
   0x2   :  { %s28_s9 = sshll.u32 %s2367_s30, 4  ;;  %s2368_s10 = smov 256   ;;  %s29_s9 = int_to_ptr.vmem [resolvable:$true] %s28_s9 }
   0x3   :  { %s2369_s11 = smov 16  }
   0x4   :  { %34 = dma.hbm_to_vmem [thread:$0]  %s27_s29, 4096, %s29_s9, [#allocation3], %s2368_s10, %s2368_s10, %s2369_s11  }
   0x5   :  { %2363 = dma.done.wait [#allocation3], 4096  }
   0x6   :  { %2364 = vsyncadd [#allocation3], 4294963200  ;;  %v1950_v0 = vld [vmem:[%s3242_s2 + $0xe0] sm:$0xf]  ;;  %v2148_v1 = vld [vmem:[%s3242_s2 + $0xec] sm:$0xf0] }
   0x7   :  { %v2146_v2 = vld [vmem:[%s3242_s2 + $0xe4] sm:$0xf]  ;;  %v1951_v3 = vor.u32 %v2148_v1, %v1950_v0  ;;  %v1952_v4 = vld [vmem:[%s3242_s2 + $0xf0] sm:$0xf0]  ;;  %v1958_v5 = vld [vmem:[%s3242_s2 + $0xe8] sm:$0xf] }
   0x8   :  { %v2149_v6 = vld [vmem:[%s3242_s2 + $0xf4] sm:$0xf0]  ;;  %v1955_v7 = vor.u32 %v2146_v2, %v1952_v4  ;;  %v2147_v9 = vld [vmem:[%s3242_s2 + $0xec] sm:$0xf]  ;;  %v1960_v10 = vld [vmem:[%s3242_s2 + $0xf8] sm:$0xf0] }
   0x9   :  { %v1959_v8 = vor.u32 %v2149_v6, %v1958_v5  ;;  %v1934_v11 = vld [vmem:[%s3242_s2 + $0xc0] sm:$0xf]  ;;  %263 = vmatpush.bf16.msra.mxu0 %v1951_v3  ;;  %v1963_v12 = vor.u32 %v2147_v9, %v1960_v10  ;;  %v2144_v13 = vld [vmem:[%s3242_s2 + $0xcc] sm:$0xf0]  ;;  %v2142_v14 = vld [vmem:[%s3242_s2 + $0xc4] sm:$0xf] }
   0xa   :  { %v1936_v15 = vld [vmem:[%s3242_s2 + $0xd0] sm:$0xf0]  ;;  %282 = vmatpush.bf16.msra.mxu1 %v1955_v7  ;;  %v1935_v16 = vor.u32 %v2144_v13, %v1934_v11  ;;  %v1942_v18 = vld [vmem:[%s3242_s2 + $0xc8] sm:$0xf]  ;;  %v2145_v19 = vld [vmem:[%s3242_s2 + $0xd4] sm:$0xf0] }
   0xb   :  { %301 = vmatpush.bf16.msra.mxu2 %v1959_v8  ;;  %v1939_v17 = vor.u32 %v2142_v14, %v1936_v15  ;;  %v2143_v20 = vld [vmem:[%s3242_s2 + $0xcc] sm:$0xf]  ;;  %320 = vmatpush.bf16.msra.mxu3 %v1963_v12  ;;  %v1943_v21 = vor.u32 %v2145_v19, %v1942_v18  ;;  %v1944_v22 = vld [vmem:[%s3242_s2 + $0xd8] sm:$0xf0]  ;;  %v1918_v23 = vld [vmem:[%s3242_s2 + $0xa0] sm:$0xf] }
   0xc   :  { %v2140_v24 = vld [vmem:[%s3242_s2 + $0xac] sm:$0xf0]  ;;  %v1947_v25 = vor.u32 %v2143_v20, %v1944_v22  ;;  %v2138_v26 = vld [vmem:[%s3242_s2 + $0xa4] sm:$0xf]  ;;  %v1920_v27 = vld [vmem:[%s3242_s2 + $0xb0] sm:$0xf0] }
   0xd   :  { %v1926_v28 = vld [vmem:[%s3242_s2 + $0xa8] sm:$0xf]  ;;  %264 = vmatpush.bf16.msra.mxu0 %v1935_v16  ;;  %v1919_v29 = vor.u32 %v2140_v24, %v1918_v23  ;;  %v2141_v30 = vld [vmem:[%s3242_s2 + $0xb4] sm:$0xf0]  ;;  %v2139_v31 = vld [vmem:[%s3242_s2 + $0xac] sm:$0xf]  ;;  %v1923_v33 = vor.u32 %v2138_v26, %v1920_v27 }
   0xe   :  { %v1928_v32 = vld [vmem:[%s3242_s2 + $0xb8] sm:$0xf0]  ;;  %283 = vmatpush.bf16.msra.mxu1 %v1939_v17  ;;  %v1927_v34 = vor.u32 %v2141_v30, %v1926_v28  ;;  %v1902_v35 = vld [vmem:[%s3242_s2 + $0x80] sm:$0xf]  ;;  %v2136_v36 = vld [vmem:[%s3242_s2 + $0x8c] sm:$0xf0] }
   0xf   :  { %302 = vmatpush.bf16.msra.mxu2 %v1943_v21  ;;  %v2134_v37 = vld [vmem:[%s3242_s2 + $0x84] sm:$0xf]  ;;  %321 = vmatpush.bf16.msra.mxu3 %v1947_v25  ;;  %v1931_v38 = vor.u32 %v2139_v31, %v1928_v32  ;;  %v1904_v39 = vld [vmem:[%s3242_s2 + $0x90] sm:$0xf0]  ;;  %v1910_v40 = vld [vmem:[%s3242_s2 + $0x88] sm:$0xf]  ;;  %v1903_v44 = vor.u32 %v2136_v36, %v1902_v35 }
  0x10   :  { %v2137_v41 = vld [vmem:[%s3242_s2 + $0x94] sm:$0xf0]  ;;  %v2135_v42 = vld [vmem:[%s3242_s2 + $0x8c] sm:$0xf]  ;;  %v1912_v43 = vld [vmem:[%s3242_s2 + $0x98] sm:$0xf0]  ;;  %v1907_v45 = vor.u32 %v2134_v37, %v1904_v39 }
  0x11   :  { %265 = vmatpush.bf16.msra.mxu0 %v1919_v29  ;;  %v1911_v46 = vor.u32 %v2137_v41, %v1910_v40  ;;  %v1886_v47 = vld [vmem:[%s3242_s2 + $0x60] sm:$0xf]  ;;  %v2132_v48 = vld [vmem:[%s3242_s2 + $0x6c] sm:$0xf0]  ;;  %v2130_v49 = vld [vmem:[%s3242_s2 + $0x64] sm:$0xf]  ;;  %v1915_v50 = vor.u32 %v2135_v42, %v1912_v43 }
  0x12   :  { %284 = vmatpush.bf16.msra.mxu1 %v1923_v33  ;;  %v1888_v51 = vld [vmem:[%s3242_s2 + $0x70] sm:$0xf0]  ;;  %v1894_v52 = vld [vmem:[%s3242_s2 + $0x68] sm:$0xf]  ;;  %v2133_v53 = vld [vmem:[%s3242_s2 + $0x74] sm:$0xf0]  ;;  %v1887_v56 = vor.u32 %v2132_v48, %v1886_v47 }
  0x13   :  { %303 = vmatpush.bf16.msra.mxu2 %v1927_v34  ;;  %322 = vmatpush.bf16.msra.mxu3 %v1931_v38  ;;  %v2131_v54 = vld [vmem:[%s3242_s2 + $0x6c] sm:$0xf]  ;;  %v1896_v55 = vld [vmem:[%s3242_s2 + $0x78] sm:$0xf0]  ;;  %v1891_v57 = vor.u32 %v2130_v49, %v1888_v51  ;;  %v1895_v58 = vor.u32 %v2133_v53, %v1894_v52  ;;  %v1870_v59 = vld [vmem:[%s3242_s2 + $0x40] sm:$0xf] }
  0x14   :  { %v2128_v60 = vld [vmem:[%s3242_s2 + $0x4c] sm:$0xf0]  ;;  %v2126_v61 = vld [vmem:[%s3242_s2 + $0x44] sm:$0xf]  ;;  %v1899_v62 = vor.u32 %v2131_v54, %v1896_v55  ;;  %v1872_v63 = vld [vmem:[%s3242_s2 + $0x50] sm:$0xf0] }
  0x15   :  { %266 = vmatpush.bf16.msra.mxu0 %v1903_v44  ;;  %v1878_v0 = vld [vmem:[%s3242_s2 + $0x48] sm:$0xf]  ;;  %v2129_v1 = vld [vmem:[%s3242_s2 + $0x54] sm:$0xf0]  ;;  %v2127_v2 = vld [vmem:[%s3242_s2 + $0x4c] sm:$0xf]  ;;  %v1871_v4 = vor.u32 %v2128_v60, %v1870_v59  ;;  %v1875_v5 = vor.u32 %v2126_v61, %v1872_v63 }
  0x16   :  { %285 = vmatpush.bf16.msra.mxu1 %v1907_v45  ;;  %v1880_v3 = vld [vmem:[%s3242_s2 + $0x58] sm:$0xf0]  ;;  %v1879_v6 = vor.u32 %v2129_v1, %v1878_v0  ;;  %v1854_v7 = vld [vmem:[%s3242_s2 + $0x20] sm:$0xf]  ;;  %v2124_v8 = vld [vmem:[%s3242_s2 + $0x2c] sm:$0xf0] }
  0x17   :  { %304 = vmatpush.bf16.msra.mxu2 %v1911_v46  ;;  %323 = vmatpush.bf16.msra.mxu3 %v1915_v50  ;;  %v2122_v9 = vld [vmem:[%s3242_s2 + $0x24] sm:$0xf]  ;;  %v1883_v10 = vor.u32 %v2127_v2, %v1880_v3  ;;  %v1856_v11 = vld [vmem:[%s3242_s2 + $0x30] sm:$0xf0]  ;;  %v1862_v12 = vld [vmem:[%s3242_s2 + $0x28] sm:$0xf]  ;;  %v1855_v16 = vor.u32 %v2124_v8, %v1854_v7 }
  0x18   :  { %v2125_v13 = vld [vmem:[%s3242_s2 + $0x34] sm:$0xf0]  ;;  %v2123_v14 = vld [vmem:[%s3242_s2 + $0x2c] sm:$0xf]  ;;  %v1864_v15 = vld [vmem:[%s3242_s2 + $0x38] sm:$0xf0]  ;;  %v1859_v18 = vor.u32 %v2122_v9, %v1856_v11 }
  0x19   :  { %267 = vmatpush.bf16.msra.mxu0 %v1887_v56  ;;  %v1838_v17 = vld [vmem:[%s3242_s2] sm:$0xf]  ;;  %v1863_v19 = vor.u32 %v2125_v13, %v1862_v12  ;;  %v2120_v20 = vld [vmem:[%s3242_s2 + $0xc] sm:$0xf0]  ;;  %v2118_v21 = vld [vmem:[%s3242_s2 + $0x4] sm:$0xf]  ;;  %v1867_v23 = vor.u32 %v2123_v14, %v1864_v15 }
  0x1a   :  { %286 = vmatpush.bf16.msra.mxu1 %v1891_v57  ;;  %v1840_v22 = vld [vmem:[%s3242_s2 + $0x10] sm:$0xf0]  ;;  %v1846_v24 = vld [vmem:[%s3242_s2 + $0x8] sm:$0xf]  ;;  %v2121_v25 = vld [vmem:[%s3242_s2 + $0x14] sm:$0xf0]  ;;  %v1839_v30 = vor.u32 %v2120_v20, %v1838_v17 }
  0x1b   :  { %305 = vmatpush.bf16.msra.mxu2 %v1895_v58  ;;  %324 = vmatpush.bf16.msra.mxu3 %v1899_v62  ;;  %v2119_v26 = vld [vmem:[%s3242_s2 + $0xc] sm:$0xf]  ;;  %v1848_v27 = vld [vmem:[%s3242_s2 + $0x18] sm:$0xf0]  ;;  %v2078_v28 = vld [vmem:[#allocation2 + $0xe0] sm:$0xf]  ;;  %v1843_v33 = vor.u32 %v2118_v21, %v1840_v22  ;;  %v1847_v34 = vor.u32 %v2121_v25, %v1846_v24 }
  0x1c   :  { %v2180_v29 = vld [vmem:[#allocation2 + $0xec] sm:$0xf0]  ;;  %v2178_v31 = vld [vmem:[#allocation2 + $0xe4] sm:$0xf]  ;;  %v2080_v32 = vld [vmem:[#allocation2 + $0xf0] sm:$0xf0]  ;;  %v1851_v36 = vor.u32 %v2119_v26, %v1848_v27 }
  0x1d   :  { %268 = vmatpush.bf16.msra.mxu0 %v1871_v4  ;;  %v2116_v35 = vld [vmem:[%s3240_s0] sm:$0xff]  ;;  %v2614_v37 = vor.u32 %v2180_v29, %v2078_v28  ;;  %v2086_v38 = vld [vmem:[#allocation2 + $0xe8] sm:$0xf]  ;;  %v2181_v39 = vld [vmem:[#allocation2 + $0xf4] sm:$0xf0]  ;;  %v2616_v41 = vor.u32 %v2178_v31, %v2080_v32  ;;  %s1816_s23 = sshll.u32 %s3248_s8, 4  ;;  %s1817_s23 = int_to_ptr.hbm [resolvable:$true] %s1816_s23 }
  0x1e   :  { %287 = vmatpush.bf16.msra.mxu1 %v1875_v5  ;;  %v2179_v40 = vld [vmem:[#allocation2 + $0xec] sm:$0xf]  ;;  %v2088_v42 = vld [vmem:[#allocation2 + $0xf8] sm:$0xf0]  ;;  %v2062_v43 = vld [vmem:[#allocation2 + $0xc0] sm:$0xf]  ;;  %v2618_v47 = vor.u32 %v2181_v39, %v2086_v38 }
  0x1f   :  { %306 = vmatpush.bf16.msra.mxu2 %v1879_v6  ;;  %325 = vmatpush.bf16.msra.mxu3 %v1883_v10  ;;  %v2176_v44 = vld [vmem:[#allocation2 + $0xcc] sm:$0xf0]  ;;  %v2174_v45 = vld [vmem:[#allocation2 + $0xc4] sm:$0xf]  ;;  %v2064_v46 = vld [vmem:[#allocation2 + $0xd0] sm:$0xf0]  ;;  %v2621_v48 = vor.u32 %v2179_v40, %v2088_v42 }
  0x20   :  { %v2623_v49 = vor.u32 %v2176_v44, %v2062_v43  ;;  %v2070_v50 = vld [vmem:[#allocation2 + $0xc8] sm:$0xf]  ;;  %v2177_v51 = vld [vmem:[#allocation2 + $0xd4] sm:$0xf0]  ;;  %v2175_v52 = vld [vmem:[#allocation2 + $0xcc] sm:$0xf]  ;;  %v2626_v53 = vor.u32 %v2174_v45, %v2064_v46 }
  0x21   :  { %269 = vmatpush.bf16.msra.mxu0 %v1855_v16  ;;  %v2072_v54 = vld [vmem:[#allocation2 + $0xd8] sm:$0xf0]  ;;  %v2046_v55 = vld [vmem:[#allocation2 + $0xa0] sm:$0xf]  ;;  %v2172_v56 = vld [vmem:[#allocation2 + $0xac] sm:$0xf0]  ;;  %v2629_v59 = vor.u32 %v2177_v51, %v2070_v50 }
  0x22   :  { %288 = vmatpush.bf16.msra.mxu1 %v1859_v18  ;;  %v2170_v57 = vld [vmem:[#allocation2 + $0xa4] sm:$0xf]  ;;  %v2048_v58 = vld [vmem:[#allocation2 + $0xb0] sm:$0xf0]  ;;  %v2633_v60 = vor.u32 %v2175_v52, %v2072_v54  ;;  %v2635_v61 = vor.u32 %v2172_v56, %v2046_v55  ;;  %v2054_v62 = vld [vmem:[#allocation2 + $0xa8] sm:$0xf] }
  0x23   :  { %307 = vmatpush.bf16.msra.mxu2 %v1863_v19  ;;  %326 = vmatpush.bf16.msra.mxu3 %v1867_v23  ;;  %v2173_v63 = vld [vmem:[#allocation2 + $0xb4] sm:$0xf0]  ;;  %v2171_v0 = vld [vmem:[#allocation2 + $0xac] sm:$0xf]  ;;  %v2638_v1 = vor.u32 %v2170_v57, %v2048_v58  ;;  %v2056_v2 = vld [vmem:[#allocation2 + $0xb8] sm:$0xf0] }
  0x24   :  { %v2030_v3 = vld [vmem:[#allocation2 + $0x80] sm:$0xf]  ;;  %v2168_v4 = vld [vmem:[#allocation2 + $0x8c] sm:$0xf0]  ;;  %v2166_v5 = vld [vmem:[#allocation2 + $0x84] sm:$0xf]  ;;  %v2641_v7 = vor.u32 %v2173_v63, %v2054_v62  ;;  %v2645_v8 = vor.u32 %v2171_v0, %v2056_v2 }
  0x25   :  { %270 = vmatpush.bf16.msra.mxu0 %v1839_v30  ;;  %v2032_v6 = vld [vmem:[#allocation2 + $0x90] sm:$0xf0]  ;;  %v2647_v9 = vor.u32 %v2168_v4, %v2030_v3  ;;  %v2038_v10 = vld [vmem:[#allocation2 + $0x88] sm:$0xf]  ;;  %v2169_v11 = vld [vmem:[#allocation2 + $0x94] sm:$0xf0] }
  0x26   :  { %289 = vmatpush.bf16.msra.mxu1 %v1843_v33  ;;  %v2167_v12 = vld [vmem:[#allocation2 + $0x8c] sm:$0xf]  ;;  %v2650_v13 = vor.u32 %v2166_v5, %v2032_v6  ;;  %v2040_v14 = vld [vmem:[#allocation2 + $0x98] sm:$0xf0]  ;;  %v2014_v15 = vld [vmem:[#allocation2 + $0x60] sm:$0xf]  ;;  %v2653_v19 = vor.u32 %v2169_v11, %v2038_v10 }
  0x27   :  { %308 = vmatpush.bf16.msra.mxu2 %v1847_v34  ;;  %327 = vmatpush.bf16.msra.mxu3 %v1851_v36  ;;  %v2164_v16 = vld [vmem:[#allocation2 + $0x6c] sm:$0xf0]  ;;  %v2162_v17 = vld [vmem:[#allocation2 + $0x64] sm:$0xf]  ;;  %v2016_v18 = vld [vmem:[#allocation2 + $0x70] sm:$0xf0]  ;;  %v2660_v21 = vor.u32 %v2167_v12, %v2040_v14 }
  0x28   :  { %271 = vmatmul.bf16.vlgmr.msra.gmra.mxu0 %v2116_v35  ;;  %v2117_v20 = vld [vmem:[%s3240_s0 + $0x8] sm:$0xff]  ;;  %v2662_v22 = vor.u32 %v2164_v16, %v2014_v15  ;;  %v2165_v24 = vld [vmem:[#allocation2 + $0x74] sm:$0xf0]  ;;  %v2665_v26 = vor.u32 %v2162_v17, %v2016_v18  ;;  %v2024_v27 = vld [vmem:[#allocation2 + $0x78] sm:$0xf0] }
  0x29   :  { %612 = vmatpush.bf16.msrb.mxu0 %v2614_v37  ;;  %290 = vmatmul.bf16.vlgmr.msra.gmra.mxu1 %v2116_v35  ;;  %v2022_v23 = vld [vmem:[#allocation2 + $0x68] sm:$0xf]  ;;  %v2163_v25 = vld [vmem:[#allocation2 + $0x6c] sm:$0xf]  ;;  %v1998_v28 = vld [vmem:[#allocation2 + $0x40] sm:$0xf] }
  0x2a   :  { %625 = vmatpush.bf16.msrb.mxu1 %v2616_v41  ;;  %309 = vmatmul.bf16.vlgmr.msra.gmra.mxu2 %v2116_v35  ;;  %v2160_v29 = vld [vmem:[#allocation2 + $0x4c] sm:$0xf0]  ;;  %v2158_v30 = vld [vmem:[#allocation2 + $0x44] sm:$0xf]  ;;  %v2000_v31 = vld [vmem:[#allocation2 + $0x50] sm:$0xf0]  ;;  %v2668_v32 = vor.u32 %v2165_v24, %v2022_v23  ;;  %v2672_v33 = vor.u32 %v2163_v25, %v2024_v27  ;;  %v339_v23 = vlaneseq }
  0x2b   :  { %328 = vmatmul.bf16.vlgmr.msra.gmra.mxu3 %v2116_v35  ;;  %638 = vmatpush.bf16.msrb.mxu2 %v2618_v47  ;;  %v2674_v34 = vor.u32 %v2160_v29, %v1998_v28  ;;  %v2006_v35 = vld [vmem:[#allocation2 + $0x48] sm:$0xf]  ;;  %v2161_v36 = vld [vmem:[#allocation2 + $0x54] sm:$0xf0]  ;;  %v2159_v38 = vld [vmem:[#allocation2 + $0x4c] sm:$0xf]  ;;  %v2677_v39 = vor.u32 %v2158_v30, %v2000_v31 }
  0x2c   :  { %651 = vmatpush.bf16.msrb.mxu3 %v2621_v48  ;;  %v2008_v40 = vld [vmem:[#allocation2 + $0x58] sm:$0xf0]  ;;  %v1982_v42 = vld [vmem:[#allocation2 + $0x20] sm:$0xf]  ;;  %v2156_v43 = vld [vmem:[#allocation2 + $0x2c] sm:$0xf0]  ;;  %v2680_v46 = vor.u32 %v2161_v36, %v2006_v35 }
  0x2d   :  { %613 = vmatpush.bf16.msrb.mxu0 %v2623_v49  ;;  %v2154_v44 = vld [vmem:[#allocation2 + $0x24] sm:$0xf]  ;;  %v1984_v45 = vld [vmem:[#allocation2 + $0x30] sm:$0xf0]  ;;  %v2684_v50 = vor.u32 %v2159_v38, %v2008_v40  ;;  %v2686_v51 = vor.u32 %v2156_v43, %v1982_v42  ;;  %v1990_v52 = vld [vmem:[#allocation2 + $0x28] sm:$0xf] }
  0x2e   :  { %626 = vmatpush.bf16.msrb.mxu1 %v2626_v53  ;;  %v2157_v54 = vld [vmem:[#allocation2 + $0x34] sm:$0xf0]  ;;  %v2155_v55 = vld [vmem:[#allocation2 + $0x2c] sm:$0xf]  ;;  %v2689_v56 = vor.u32 %v2154_v44, %v1984_v45  ;;  %v1992_v57 = vld [vmem:[#allocation2 + $0x38] sm:$0xf0] }
  0x2f   :  { %639 = vmatpush.bf16.msrb.mxu2 %v2629_v59  ;;  %v1966_v58 = vld [vmem:[#allocation2] sm:$0xf]  ;;  %v2152_v62 = vld [vmem:[#allocation2 + $0xc] sm:$0xf0]  ;;  %v2150_v63 = vld [vmem:[#allocation2 + $0x4] sm:$0xf]  ;;  %v2692_v2 = vor.u32 %v2157_v54, %v1990_v52  ;;  %v2696_v3 = vor.u32 %v2155_v55, %v1992_v57 }
  0x30   :  { %652 = vmatpush.bf16.msrb.mxu3 %v2633_v60  ;;  %v1968_v0 = vld [vmem:[#allocation2 + $0x10] sm:$0xf0]  ;;  %v2698_v4 = vor.u32 %v2152_v62, %v1966_v58  ;;  %v1974_v5 = vld [vmem:[#allocation2 + $0x8] sm:$0xf]  ;;  %v2153_v6 = vld [vmem:[#allocation2 + $0x14] sm:$0xf0] }
  0x31   :  { %614 = vmatpush.bf16.msrb.mxu0 %v2635_v61  ;;  %v2701_v10 = vor.u32 %v2150_v63, %v1968_v0  ;;  %v2151_v11 = vld [vmem:[#allocation2 + $0xc] sm:$0xf]  ;;  %v1976_v12 = vld [vmem:[#allocation2 + $0x18] sm:$0xf0]  ;;  %v2706_v14 = vld [vmem:[%s3245_s5] sm:$0xf]  ;;  %v2709_v15 = vor.u32 %v2153_v6, %v1974_v5 }
  0x32   :  { %627 = vmatpush.bf16.msrb.mxu1 %v2638_v1  ;;  %v2713_v16 = vor.u32 %v2151_v11, %v1976_v12  ;;  %v451_v17 = vpack.c.bf16 %v2706_v14, %v2706_v14  ;;  %v81_v24 = vld [vmem:[%s3244_s4] sm:$0xf]  ;;  %v2787_v25 = vand.u32 127, %v339_v23 }
  0x33   :  { %640 = vmatpush.bf16.msrb.mxu2 %v2641_v7  ;;  %v83_v27 = vperm.slane %v81_v24, 0  ;;  %v84_v29 = vperm.slane %v81_v24, 1  ;;  %v86_v42 = vperm.slane %v81_v24, 3  ;;  %v85_v44 = vperm.slane %v81_v24, 2 }
  0x34   :  { %653 = vmatpush.bf16.msrb.mxu3 %v2645_v8  ;;  %3265 = vst [vmem:[#allocation8_spill] sm:$0xff] %v2787_v25  ;;  %v341_v38 = vadd.s32 128, %v2787_v25  ;;  %v342_v52 = vadd.s32 256, %v2787_v25  ;;  %vm392_vm0 = vcmp.lt.s32.totalorder %v2787_v25, 64  ;;  %v343_v58 = vadd.s32 384, %v2787_v25 }
  0x35   :  { %615 = vmatpush.bf16.msrb.mxu0 %v2647_v9 }
  0x36   :  { %628 = vmatpush.bf16.msrb.mxu1 %v2650_v13  ;;  %v355_v43 = vand.u32 127, %v341_v38  ;;  %v362_v23 = vand.u32 127, %v342_v52 }
  0x37   :  { %641 = vmatpush.bf16.msrb.mxu2 %v2653_v19 }
  0x38   :  { %654 = vmatpush.bf16.msrb.mxu3 %v2660_v21  ;;  %276 = vmatmul.bf16.gmra.mxu0 %v2117_v20  ;;  %vm2793_vm1 = vcmp.lt.s32.totalorder %v355_v43, 64  ;;  %vm2813_vm2 = vcmp.lt.s32.totalorder %v362_v23, 64 }
  0x39   :  { %616 = vmatpush.bf16.msrb.mxu0 %v2662_v22  ;;  %295 = vmatmul.bf16.gmra.mxu1 %v2117_v20 }
  0x3a   :  { %629 = vmatpush.bf16.msrb.mxu1 %v2665_v26  ;;  %314 = vmatmul.bf16.gmra.mxu2 %v2117_v20 }
  0x3b   :  { %333 = vmatmul.bf16.gmra.mxu3 %v2117_v20  ;;  %642 = vmatpush.bf16.msrb.mxu2 %v2668_v32 }
  0x3c   :  { %655 = vmatpush.bf16.msrb.mxu3 %v2672_v33 }
  0x3d   :  { %617 = vmatpush.bf16.msrb.mxu0 %v2674_v34 }
  0x3e   :  { %630 = vmatpush.bf16.msrb.mxu1 %v2677_v39 }
  0x3f   :  { %643 = vmatpush.bf16.msrb.mxu2 %v2680_v46 }
  0x40   :  { %656 = vmatpush.bf16.msrb.mxu3 %v2684_v50 }
  0x41   :  { %618 = vmatpush.bf16.msrb.mxu0 %v2686_v51 }
  0x42   :  { %631 = vmatpush.bf16.msrb.mxu1 %v2689_v56 }
  0x43   :  { %644 = vmatpush.bf16.msrb.mxu2 %v2692_v2 }
  0x44   :  { %657 = vmatpush.bf16.msrb.mxu3 %v2696_v3 }
  0x45   :  { %619 = vmatpush.bf16.msrb.mxu0 %v2698_v4 }
  0x46   :  { %632 = vmatpush.bf16.msrb.mxu1 %v2701_v10 }
  0x47   :  { %645 = vmatpush.bf16.msrb.mxu2 %v2709_v15 }
  0x48   :  { %658 = vmatpush.bf16.msrb.mxu3 %v2713_v16  ;;  %620 = vmatmul.bf16.vlgmr.msrb.gmra.mxu0 %v451_v17 }
  0x49   :  { %739 = vmatpush.bf16.msra.mxu0 %v2614_v37  ;;  %633 = vmatmul.bf16.vlgmr.msrb.gmra.mxu1 %v451_v17 }
  0x4a   :  { %752 = vmatpush.bf16.msra.mxu1 %v2616_v41  ;;  %646 = vmatmul.bf16.vlgmr.msrb.gmra.mxu2 %v451_v17 }
  0x4b   :  { %765 = vmatpush.bf16.msra.mxu2 %v2618_v47  ;;  %659 = vmatmul.bf16.vlgmr.msrb.gmra.mxu3 %v451_v17 }
  0x4c   :  { %778 = vmatpush.bf16.msra.mxu3 %v2621_v48 }
  0x4d   :  { %740 = vmatpush.bf16.msra.mxu0 %v2623_v49 }
  0x4e   :  { %753 = vmatpush.bf16.msra.mxu1 %v2626_v53 }
  0x4f   :  { %766 = vmatpush.bf16.msra.mxu2 %v2629_v59 }
  0x50   :  { %779 = vmatpush.bf16.msra.mxu3 %v2633_v60 }
  0x51   :  { %741 = vmatpush.bf16.msra.mxu0 %v2635_v61 }
  0x52   :  { %754 = vmatpush.bf16.msra.mxu1 %v2638_v1 }
  0x53   :  { %767 = vmatpush.bf16.msra.mxu2 %v2641_v7 }
  0x54   :  { %780 = vmatpush.bf16.msra.mxu3 %v2645_v8 }
  0x55   :  { %742 = vmatpush.bf16.msra.mxu0 %v2647_v9 }
  0x56   :  { %755 = vmatpush.bf16.msra.mxu1 %v2650_v13 }
  0x57   :  { %768 = vmatpush.bf16.msra.mxu2 %v2653_v19 }
  0x58   :  { %781 = vmatpush.bf16.msra.mxu3 %v2660_v21 }
  0x59   :  { %743 = vmatpush.bf16.msra.mxu0 %v2662_v22 }
  0x5a   :  { %756 = vmatpush.bf16.msra.mxu1 %v2665_v26 }
  0x5b   :  { %769 = vmatpush.bf16.msra.mxu2 %v2668_v32 }
  0x5c   :  { %782 = vmatpush.bf16.msra.mxu3 %v2672_v33 }
  0x5d   :  { %744 = vmatpush.bf16.msra.mxu0 %v2674_v34 }
  0x5e   :  { %757 = vmatpush.bf16.msra.mxu1 %v2677_v39 }
  0x5f   :  { %770 = vmatpush.bf16.msra.mxu2 %v2680_v46 }
  0x60   :  { %783 = vmatpush.bf16.msra.mxu3 %v2684_v50 }
  0x61   :  { %745 = vmatpush.bf16.msra.mxu0 %v2686_v51 }
  0x62   :  { %758 = vmatpush.bf16.msra.mxu1 %v2689_v56 }
  0x63   :  { %771 = vmatpush.bf16.msra.mxu2 %v2692_v2 }
  0x64   :  { %784 = vmatpush.bf16.msra.mxu3 %v2696_v3 }
  0x65   :  { %746 = vmatpush.bf16.msra.mxu0 %v2698_v4 }
  0x66   :  { %759 = vmatpush.bf16.msra.mxu1 %v2701_v10 }
  0x67   :  { %772 = vmatpush.bf16.msra.mxu2 %v2709_v15 }
  0x68   :  { %785 = vmatpush.bf16.msra.mxu3 %v2713_v16 }
  0x69   :  { %906 = vmatpush.bf16.msrb.mxu0 %v2614_v37 }
  0x6a   :  { %919 = vmatpush.bf16.msrb.mxu1 %v2616_v41 }
  0x6b   :  { %932 = vmatpush.bf16.msrb.mxu2 %v2618_v47 }
  0x6c   :  { %945 = vmatpush.bf16.msrb.mxu3 %v2621_v48 }
  0x6d   :  { %907 = vmatpush.bf16.msrb.mxu0 %v2623_v49 }
  0x6e   :  { %920 = vmatpush.bf16.msrb.mxu1 %v2626_v53 }
  0x6f   :  { %933 = vmatpush.bf16.msrb.mxu2 %v2629_v59 }
  0x70   :  { %946 = vmatpush.bf16.msrb.mxu3 %v2633_v60 }
  0x71   :  { %908 = vmatpush.bf16.msrb.mxu0 %v2635_v61 }
  0x72   :  { %921 = vmatpush.bf16.msrb.mxu1 %v2638_v1 }
  0x73   :  { %934 = vmatpush.bf16.msrb.mxu2 %v2641_v7 }
  0x74   :  { %947 = vmatpush.bf16.msrb.mxu3 %v2645_v8 }
  0x75   :  { %909 = vmatpush.bf16.msrb.mxu0 %v2647_v9 }
  0x76   :  { %922 = vmatpush.bf16.msrb.mxu1 %v2650_v13 }
  0x77   :  { %935 = vmatpush.bf16.msrb.mxu2 %v2653_v19 }
  0x78   :  { %948 = vmatpush.bf16.msrb.mxu3 %v2660_v21 }
  0x79   :  { %910 = vmatpush.bf16.msrb.mxu0 %v2662_v22 }
  0x7a   :  { %923 = vmatpush.bf16.msrb.mxu1 %v2665_v26 }
  0x7b   :  { %936 = vmatpush.bf16.msrb.mxu2 %v2668_v32 }
  0x7c   :  { %949 = vmatpush.bf16.msrb.mxu3 %v2672_v33 }
  0x7d   :  { %911 = vmatpush.bf16.msrb.mxu0 %v2674_v34 }
  0x7e   :  { %924 = vmatpush.bf16.msrb.mxu1 %v2677_v39 }
  0x7f   :  { %937 = vmatpush.bf16.msrb.mxu2 %v2680_v46 }
  0x80   :  { %950 = vmatpush.bf16.msrb.mxu3 %v2684_v50 }
  0x81   :  { %912 = vmatpush.bf16.msrb.mxu0 %v2686_v51 }
  0x82   :  { %925 = vmatpush.bf16.msrb.mxu1 %v2689_v56 }
  0x83   :  { %938 = vmatpush.bf16.msrb.mxu2 %v2692_v2 }
  0x84   :  { %951 = vmatpush.bf16.msrb.mxu3 %v2696_v3 }
  0x85   :  { %913 = vmatpush.bf16.msrb.mxu0 %v2698_v4 }
  0x86   :  { %926 = vmatpush.bf16.msrb.mxu1 %v2701_v10 }
  0x87   :  { %939 = vmatpush.bf16.msrb.mxu2 %v2709_v15 }
  0x88   :  { %952 = vmatpush.bf16.msrb.mxu3 %v2713_v16 }
  0xa5   :  { %v272_v18 = vpop.f32.mrf.mxu0 }
  0xa6   :  { %v291_v20 = vpop.f32.mrf.mxu1 }
  0xad   :  { %v310_v28 = vpop.f32.mrf.mxu2  ;;  %v274_v31 = vpop.f32.mrf.mxu0 }
  0xae   :  { %v329_v30 = vpop.f32.mrf.mxu3  ;;  %v275_v35 = vadd.f32 %v274_v31, %v83_v27  ;;  %v293_v36 = vpop.f32.mrf.mxu1 }
  0xaf   :  { %v294_v40 = vadd.f32 %v293_v36, %v84_v29  ;;  %v369_v36 = vand.u32 127, %v343_v58 }
  0xb0   :  { %v1187_v62 = vrot.slane %v275_v35, 4 }
  0xb1   :  { %v1188_v11 = vrot.slane %v294_v40, 4  ;;  %vm2817_vm3 = vcmp.lt.s32.totalorder %v369_v36, 64 }
  0xb5   :  { %v312_v45 = vpop.f32.mrf.mxu2  ;;  %v277_v57 = vpop.f32.mrf.mxu0 }
  0xb6   :  { %v313_v54 = vadd.f32 %v312_v45, %v85_v44  ;;  %v331_v55 = vpop.f32.mrf.mxu3  ;;  %v278_v0 = vadd.f32 %v277_v57, %v83_v27  ;;  %v296_v5 = vpop.f32.mrf.mxu1  ;;  %v273_v45 = vadd.f32 %v272_v18, %v83_v27 }
  0xb7   :  { %v332_v63 = vadd.f32 %v331_v55, %v86_v42  ;;  %v297_v12 = vadd.f32 %v296_v5, %v84_v29  ;;  %v292_v55 = vadd.f32 %v291_v20, %v84_v29 }
  0xb8   :  { %v893_v17 = vrot.slane %v278_v0, 4  ;;  %v2799_v24 = vsel %vm392_vm0, %v278_v0, %v1187_v62  ;;  %v1189_v58 = vrot.slane %v313_v54, 4 }
  0xb9   :  { %3268 = vst [vmem:[#allocation9_spill] sm:$0xff] %v2799_v24  ;;  %v894_v31 = vrot.slane %v297_v12, 4  ;;  %v2803_v38 = vsel %vm2793_vm1, %v297_v12, %v1188_v11  ;;  %v1190_v52 = vrot.slane %v332_v63, 4 }
  0xba   :  { %3269 = vst [vmem:[#allocation10_spill] sm:$0xff] %v2803_v38  ;;  %v2807_v43 = vsel %vm392_vm0, %v275_v35, %v893_v17  ;;  %v1481_v35 = vrot.slane %v273_v45, 4 }
  0xbb   :  { %3270 = vst [vmem:[#allocation11_spill] sm:$0xff] %v2807_v43  ;;  %v2811_v57 = vsel %vm2793_vm1, %v294_v40, %v894_v31  ;;  %v1482_v40 = vrot.slane %v292_v55, 4  ;;  %v311_v43 = vadd.f32 %v310_v28, %v85_v44 }
  0xbc   :  { %3271 = vst [vmem:[#allocation12_spill] sm:$0xff] %v2811_v57 }
  0xbd   :  { %v315_v5 = vpop.f32.mrf.mxu2  ;;  %v279_v12 = vpop.f32.mrf.mxu0 }
  0xbe   :  { %v316_v0 = vadd.f32 %v315_v5, %v85_v44  ;;  %v334_v11 = vpop.f32.mrf.mxu3  ;;  %v280_v17 = vadd.f32 %v279_v12, %v83_v27  ;;  %v298_v38 = vpop.f32.mrf.mxu1  ;;  %v1483_v12 = vrot.slane %v311_v43, 4 }
  0xbf   :  { %v335_v20 = vadd.f32 %v334_v11, %v86_v42  ;;  %v299_v24 = vadd.f32 %v298_v38, %v84_v29  ;;  %v330_v38 = vadd.f32 %v329_v30, %v86_v42 }
  0xc0   :  { %v895_v31 = vrot.slane %v316_v0, 4  ;;  %v2823_v23 = vsel %vm2813_vm2, %v316_v0, %v1189_v58  ;;  %v2831_v36 = vsel %vm392_vm0, %v280_v17, %v1481_v35  ;;  %v439_v11 = vrot.slane %v280_v17, 4 }
  0xc1   :  { %3276 = vst [vmem:[#allocation13_spill] sm:$0xff] %v2823_v23  ;;  %v896_v57 = vrot.slane %v335_v20, 4  ;;  %v2827_v5 = vsel %vm2817_vm3, %v335_v20, %v1190_v52  ;;  %v2839_v29 = vsel %vm2793_vm1, %v299_v24, %v1482_v40  ;;  %v440_v58 = vrot.slane %v299_v24, 4 }
  0xc2   :  { %3277 = vst [vmem:[#allocation14_spill] sm:$0xff] %v2827_v5  ;;  %v2835_v27 = vsel %vm2813_vm2, %v313_v54, %v895_v31  ;;  %v2847_v28 = vsel %vm392_vm0, %v273_v45, %v439_v11  ;;  %v1484_v17 = vrot.slane %v330_v38, 4 }
  0xc3   :  { %3278 = vst [vmem:[#allocation15_spill] sm:$0xff] %v2831_v36  ;;  %v2843_v52 = vsel %vm2817_vm3, %v332_v63, %v896_v57  ;;  %v2852_v30 = vsel %vm2793_vm1, %v292_v55, %v440_v58 }
  0xc4   :  { %3279 = vst [vmem:[#allocation16_spill] sm:$0xff] %v2839_v29 }
  0xc5   :  { %3280 = vst [vmem:[#allocation17_spill] sm:$0xff] %v2843_v52  ;;  %v317_v0 = vpop.f32.mrf.mxu2  ;;  %v621_v54 = vpop.f32.mrf.mxu0 }
  0xc6   :  { %v318_v35 = vadd.f32 %v317_v0, %v85_v44  ;;  %v336_v20 = vpop.f32.mrf.mxu3  ;;  %v664_v40 = vadd.f32 %v621_v54, %v2847_v28  ;;  %v634_v24 = vpop.f32.mrf.mxu1 }
  0xc7   :  { %v337_v31 = vadd.f32 %v336_v20, %v86_v42  ;;  %v665_v63 = vadd.f32 %v634_v24, %v2852_v30 }
  0xc8   :  { %v2857_v44 = vsel %vm2813_vm2, %v318_v35, %v1483_v12  ;;  %v441_v57 = vrot.slane %v318_v35, 4  ;;  %v2092_v0 = vmul.f32 -1.442695, %v664_v40 }
  0xc9   :  { %3281 = vst [vmem:[#allocation18_spill] sm:$0xff] %v2857_v44  ;;  %v2861_v45 = vsel %vm2817_vm3, %v337_v31, %v1484_v17  ;;  %v2093_v42 = vmul.f32 -1.442695, %v665_v63  ;;  %v442_v63 = vrot.slane %v337_v31, 4 }
  0xca   :  { %3282 = vst [vmem:[#allocation19_spill] sm:$0xff] %v2861_v45  ;;  %2186 = vpow2.f32 %v2092_v0  ;;  %v2865_v6 = vsel %vm2813_vm2, %v311_v43, %v441_v57 }
  0xcb   :  { %2188 = vpow2.f32 %v2093_v42  ;;  %v2870_v57 = vsel %vm2817_vm3, %v330_v38, %v442_v63 }
  0xcd   :  { %v647_v55 = vpop.f32.mrf.mxu2  ;;  %v623_v20 = vpop.f32.mrf.mxu0 }
  0xce   :  { %v666_v11 = vadd.f32 %v647_v55, %v2865_v6  ;;  %v660_v58 = vpop.f32.mrf.mxu3  ;;  %v636_v12 = vpop.f32.mrf.mxu1 }
  0xcf   :  { %v667_v20 = vadd.f32 %v660_v58, %v2870_v57 }
  0xd0   :  { %v2094_v54 = vmul.f32 -1.442695, %v666_v11  ;;  %v2187_v35 = vpop.eup %2186 }
  0xd1   :  { %v2189_v40 = vpop.eup %2188  ;;  %v677_v24 = vadd.f32 1.0, %v2187_v35 }
  0xd2   :  { %2190 = vpow2.f32 %v2094_v54  ;;  %v678_v17 = vadd.f32 1.0, %v2189_v40 }
  0xd3   :  { %2192 = vrcp.f32 %v677_v24  ;;  %v691_v45 = vand.u32 2147483648, %v677_v24  ;;  %vm685_vm6 = vweird.f32 %v677_v24 }
  0xd4   :  { %2194 = vrcp.f32 %v678_v17  ;;  %v706_v31 = vand.u32 2147483648, %v678_v17  ;;  %v704_v18 = vand.u32 2147483647, %v678_v17  ;;  %vm700_vm7 = vweird.f32 %v678_v17 }
  0xd5   :  { %v649_v0 = vpop.f32.mrf.mxu2  ;;  %v692_v44 = vor.u32 1.1754944e-38, %v691_v45 }
  0xd6   :  { %v662_v42 = vpop.f32.mrf.mxu3  ;;  %vm705_vm11 = vcmp.eq.f32.partialorder %v704_v18, 8.507059e+37 }
  0xd7   :  { %v689_v42 = vand.u32 2147483647, %v677_v24 }
  0xd8   :  { %v2191_v62 = vpop.eup %2190 }
  0xd9   :  { %v679_v43 = vadd.f32 1.0, %v2191_v62  ;;  %v2193_v55 = vpop.eup %2192  ;;  %vm690_vm10 = vcmp.eq.f32.partialorder %v689_v42, 8.507059e+37 }
  0xda   :  { %v2195_v11 = vpop.eup %2194  ;;  %v681_v12 = vmul.f32 %v2193_v55, %v677_v24  ;;  %vm686_vm4 = vweird.f32 %v2193_v55 }
  0xdb   :  { %2196 = vrcp.f32 %v679_v43  ;;  %v696_v35 = vmul.f32 %v2195_v11, %v678_v17  ;;  %vm701_vm5 = vweird.f32 %v2195_v11  ;;  %vm687_vm8 = vmor %vm685_vm6, %vm686_vm4  ;;  %vm715_vm13 = vweird.f32 %v679_v43 }
  0xdc   :  { %v682_v54 = vsub.f32 1.0, %v681_v12  ;;  %2198 = vtanh.f32 %v667_v20  ;;  %vm702_vm9 = vmor %vm700_vm7, %vm701_vm5  ;;  %v707_v12 = vor.u32 1.1754944e-38, %v706_v31  ;;  %v434_v20 = vld [vmem:[%s3246_s6] sm:$0xf]  ;;  %v719_v42 = vand.u32 2147483647, %v679_v43 }
  0xdd   :  { %v697_v40 = vsub.f32 1.0, %v696_v35  ;;  %v2879_v31 = vld [vmem:[%s3241_s1] sm:$0xff] }
  0xde   :  { %v683_v0 = vmul.f32 %v2193_v55, %v682_v54  ;;  %vm720_vm15 = vcmp.eq.f32.partialorder %v719_v42, 8.507059e+37 }
  0xdf   :  { %v698_v62 = vmul.f32 %v2195_v11, %v697_v40 }
  0xe0   :  { %v684_v63 = vadd.f32 %v2193_v55, %v683_v0 }
  0xe1   :  { %v2197_v38 = vpop.eup %2196  ;;  %v699_v29 = vadd.f32 %v2195_v11, %v698_v62  ;;  %v721_v62 = vand.u32 2147483648, %v679_v43 }
  0xe2   :  { %v711_v58 = vmul.f32 %v2197_v38, %v679_v43  ;;  %v688_v35 = vsel %vm687_vm8, %v2193_v55, %v684_v63  ;;  %v2199_v54 = vpop.eup %2198  ;;  %vm716_vm12 = vweird.f32 %v2197_v38 }
  0xe3   :  { %v693_v36 = vsel %vm690_vm10, %v692_v44, %v688_v35  ;;  %v703_v25 = vsel %vm702_vm9, %v2195_v11, %v699_v29  ;;  %vm717_vm14 = vmor %vm715_vm13, %vm716_vm12 }
  0xe4   :  { %v712_v40 = vsub.f32 1.0, %v711_v58  ;;  %v708_v0 = vsel %vm705_vm11, %v707_v12, %v703_v25  ;;  %v727_v24 = vmul.f32 %v2199_v54, %v693_v36  ;;  %v722_v36 = vor.u32 1.1754944e-38, %v721_v62 }
  0xe5   :  { %v726_v5 = vmul.f32 %v708_v0, %v434_v20 }
  0xe6   :  { %v713_v17 = vmul.f32 %v2197_v38, %v712_v40 }
  0xe7   :  { %v728_v23 = vadd.f32 %v727_v24, %v726_v5 }
  0xe8   :  { %v714_v45 = vadd.f32 %v2197_v38, %v713_v17 }
  0xe9   :  { %2200 = vtanh.f32 %v728_v23  ;;  %v731_v55 = vsub.f32 %v728_v23, %v434_v20 }
  0xea   :  { %v718_v25 = vsel %vm717_vm14, %v2197_v38, %v714_v45 }
  0xeb   :  { %v732_v29 = vmul.f32 %v731_v55, %v2879_v31  ;;  %v723_v11 = vsel %vm720_vm15, %v722_v36, %v718_v25 }
  0xed   :  { %v2882_v44 = vadd.f32 %v732_v29, %v434_v20 }
  0xef   :  { %v2201_v5 = vpop.eup %2200 }
  0xf0   :  { %v2884_v18 = vmul.f32 %v2201_v5, %v723_v11 }
  0xf2   :  { %3283 = vst [vmem:[#allocation20_spill] sm:$0xff] %v2884_v18  ;;  %v734_v63 = vsub.f32 %v2884_v18, %v2706_v14 }
  0xf4   :  { %v735_v58 = vmul.f32 %v734_v63, %v2879_v31 }
  0xf6   :  { %v2890_v23 = vadd.f32 %v735_v58, %v2706_v14 }
  0xf8   :  { %v738_v43 = vpack.c.bf16 %v2890_v23, %v2890_v23 }
  0xfa   :  { %747 = vmatmul.bf16.vlgmr.msra.gmra.mxu0 %v738_v43  ;;  %760 = vmatmul.bf16.vlgmr.msra.gmra.mxu1 %v738_v43 }
  0xfb   :  { %773 = vmatmul.bf16.vlgmr.msra.gmra.mxu2 %v738_v43  ;;  %786 = vmatmul.bf16.vlgmr.msra.gmra.mxu3 %v738_v43 }
  0xfc   :  { %1033 = vmatpush.bf16.msra.mxu0 %v2614_v37  ;;  %1046 = vmatpush.bf16.msra.mxu1 %v2616_v41 }
  0xfd   :  { %1059 = vmatpush.bf16.msra.mxu2 %v2618_v47  ;;  %1072 = vmatpush.bf16.msra.mxu3 %v2621_v48 }
 0x100   :  { %1034 = vmatpush.bf16.msra.mxu0 %v2623_v49  ;;  %1047 = vmatpush.bf16.msra.mxu1 %v2626_v53 }
 0x101   :  { %1060 = vmatpush.bf16.msra.mxu2 %v2629_v59  ;;  %1073 = vmatpush.bf16.msra.mxu3 %v2633_v60 }
 0x104   :  { %1035 = vmatpush.bf16.msra.mxu0 %v2635_v61  ;;  %1048 = vmatpush.bf16.msra.mxu1 %v2638_v1 }
 0x105   :  { %1061 = vmatpush.bf16.msra.mxu2 %v2641_v7  ;;  %1074 = vmatpush.bf16.msra.mxu3 %v2645_v8 }
 0x108   :  { %1036 = vmatpush.bf16.msra.mxu0 %v2647_v9  ;;  %1049 = vmatpush.bf16.msra.mxu1 %v2650_v13 }
 0x109   :  { %1062 = vmatpush.bf16.msra.mxu2 %v2653_v19  ;;  %1075 = vmatpush.bf16.msra.mxu3 %v2660_v21 }
 0x10c   :  { %1037 = vmatpush.bf16.msra.mxu0 %v2662_v22  ;;  %1050 = vmatpush.bf16.msra.mxu1 %v2665_v26 }
 0x10d   :  { %1063 = vmatpush.bf16.msra.mxu2 %v2668_v32  ;;  %1076 = vmatpush.bf16.msra.mxu3 %v2672_v33 }
 0x110   :  { %1038 = vmatpush.bf16.msra.mxu0 %v2674_v34  ;;  %1051 = vmatpush.bf16.msra.mxu1 %v2677_v39 }
 0x111   :  { %1064 = vmatpush.bf16.msra.mxu2 %v2680_v46  ;;  %1077 = vmatpush.bf16.msra.mxu3 %v2684_v50 }
 0x114   :  { %1039 = vmatpush.bf16.msra.mxu0 %v2686_v51  ;;  %1052 = vmatpush.bf16.msra.mxu1 %v2689_v56 }
 0x115   :  { %1065 = vmatpush.bf16.msra.mxu2 %v2692_v2  ;;  %1078 = vmatpush.bf16.msra.mxu3 %v2696_v3 }
 0x118   :  { %1040 = vmatpush.bf16.msra.mxu0 %v2698_v4  ;;  %1053 = vmatpush.bf16.msra.mxu1 %v2701_v10 }
 0x119   :  { %1066 = vmatpush.bf16.msra.mxu2 %v2709_v15  ;;  %1079 = vmatpush.bf16.msra.mxu3 %v2713_v16 }
 0x177   :  { %v748_v14 = vpop.f32.mrf.mxu0  ;;  %v761_v38 = vpop.f32.mrf.mxu1 }
 0x178   :  { %v795_v12 = vrot.slane %v748_v14, 4  ;;  %v796_v20 = vrot.slane %v761_v38, 4 }
 0x17a   :  { %v803_v35 = vadd.f32 %v795_v12, %v2847_v28  ;;  %v804_v54 = vadd.f32 %v796_v20, %v2852_v30 }
 0x17c   :  { %v2095_v40 = vmul.f32 -1.442695, %v803_v35  ;;  %v2096_v0 = vmul.f32 -1.442695, %v804_v54 }
 0x17e   :  { %2202 = vpow2.f32 %v2095_v40  ;;  %v774_v24 = vpop.f32.mrf.mxu2  ;;  %v787_v17 = vpop.f32.mrf.mxu3 }
 0x17f   :  { %2204 = vpow2.f32 %v2096_v0  ;;  %v797_v45 = vrot.slane %v774_v24, 4  ;;  %v750_v62 = vpop.f32.mrf.mxu0  ;;  %v763_v55 = vpop.f32.mrf.mxu1  ;;  %v798_v30 = vrot.slane %v787_v17, 4 }
 0x181   :  { %v805_v42 = vadd.f32 %v797_v45, %v2865_v6  ;;  %v806_v38 = vadd.f32 %v798_v30, %v2870_v57 }
 0x183   :  { %v2097_v29 = vmul.f32 -1.442695, %v805_v42 }
 0x184   :  { %v2203_v25 = vpop.eup %2202 }
 0x185   :  { %v2205_v36 = vpop.eup %2204  ;;  %v816_v5 = vadd.f32 1.0, %v2203_v25  ;;  %2206 = vpow2.f32 %v2097_v29 }
 0x186   :  { %v817_v11 = vadd.f32 1.0, %v2205_v36  ;;  %v776_v28 = vpop.f32.mrf.mxu2  ;;  %v789_v63 = vpop.f32.mrf.mxu3 }
 0x187   :  { %2208 = vrcp.f32 %v816_v5  ;;  %v830_v40 = vand.u32 2147483648, %v816_v5  ;;  %v828_v45 = vand.u32 2147483647, %v816_v5  ;;  %vm824_vm3 = vweird.f32 %v816_v5 }
 0x188   :  { %2210 = vrcp.f32 %v817_v11  ;;  %v845_v0 = vand.u32 2147483648, %v817_v11  ;;  %v843_v17 = vand.u32 2147483647, %v817_v11  ;;  %vm839_vm4 = vweird.f32 %v817_v11 }
 0x189   :  { %v831_v29 = vor.u32 1.1754944e-38, %v830_v40  ;;  %vm829_vm7 = vcmp.eq.f32.partialorder %v828_v45, 8.507059e+37  ;;  %v866_v63 = vrot.slane %v2882_v44, 4 }
 0x18a   :  { %v846_v36 = vor.u32 1.1754944e-38, %v845_v0  ;;  %vm844_vm8 = vcmp.eq.f32.partialorder %v843_v17, 8.507059e+37  ;;  %v880_v17 = vrot.slane %v2890_v23, 4 }
 0x18b   :  { %v2207_v58 = vpop.eup %2206 }
 0x18c   :  { %v818_v43 = vadd.f32 1.0, %v2207_v58 }
 0x18d   :  { %v2209_v14 = vpop.eup %2208 }
 0x18e   :  { %v2211_v12 = vpop.eup %2210  ;;  %v820_v20 = vmul.f32 %v2209_v14, %v816_v5  ;;  %2212 = vrcp.f32 %v818_v43  ;;  %vm825_vm1 = vweird.f32 %v2209_v14  ;;  %v860_v40 = vand.u32 2147483648, %v818_v43 }
 0x18f   :  { %v835_v6 = vmul.f32 %v2211_v12, %v817_v11  ;;  %2214 = vtanh.f32 %v806_v38  ;;  %vm840_vm2 = vweird.f32 %v2211_v12  ;;  %vm826_vm5 = vmor %vm824_vm3, %vm825_vm1  ;;  %vm854_vm10 = vweird.f32 %v818_v43 }
 0x190   :  { %v821_v35 = vsub.f32 1.0, %v820_v20  ;;  %vm841_vm6 = vmor %vm839_vm4, %vm840_vm2  ;;  %v861_v45 = vor.u32 1.1754944e-38, %v860_v40 }
 0x191   :  { %v836_v54 = vsub.f32 1.0, %v835_v6 }
 0x192   :  { %v822_v24 = vmul.f32 %v2209_v14, %v821_v35 }
 0x193   :  { %v837_v62 = vmul.f32 %v2211_v12, %v836_v54 }
 0x194   :  { %v2213_v55 = vpop.eup %2212  ;;  %v823_v42 = vadd.f32 %v2209_v14, %v822_v24 }
 0x195   :  { %v850_v57 = vmul.f32 %v2213_v55, %v818_v43  ;;  %v838_v25 = vadd.f32 %v2211_v12, %v837_v62  ;;  %v2215_v30 = vpop.eup %2214  ;;  %vm855_vm9 = vweird.f32 %v2213_v55 }
 0x196   :  { %v827_v28 = vsel %vm826_vm5, %v2209_v14, %v823_v42  ;;  %v858_v14 = vand.u32 2147483647, %v818_v43  ;;  %vm856_vm11 = vmor %vm854_vm10, %vm855_vm9 }
 0x197   :  { %v851_v58 = vsub.f32 1.0, %v850_v57  ;;  %v832_v38 = vsel %vm829_vm7, %v831_v29, %v827_v28  ;;  %v842_v20 = vsel %vm841_vm6, %v2211_v12, %v838_v25 }
 0x198   :  { %v847_v6 = vsel %vm844_vm8, %v846_v36, %v842_v20  ;;  %v869_v35 = vmul.f32 %v2215_v30, %v832_v38  ;;  %vm859_vm12 = vcmp.eq.f32.partialorder %v858_v14, 8.507059e+37 }
 0x199   :  { %v852_v54 = vmul.f32 %v2213_v55, %v851_v58  ;;  %v868_v5 = vmul.f32 %v866_v63, %v847_v6  ;;  %v3286_v58 = vld [vmem:[#allocation12_spill] sm:$0xff] }
 0x19b   :  { %v870_v11 = vadd.f32 %v869_v35, %v868_v5  ;;  %v853_v24 = vadd.f32 %v2213_v55, %v852_v54 }
 0x19d   :  { %2216 = vtanh.f32 %v870_v11  ;;  %v2931_v62 = vsub.f32 %v870_v11, %v866_v63  ;;  %v857_v0 = vsel %vm856_vm11, %v2213_v55, %v853_v24  ;;  %v3285_v63 = vld [vmem:[#allocation11_spill] sm:$0xff] }
 0x19e   :  { %v862_v12 = vsel %vm859_vm12, %v861_v45, %v857_v0 }
 0x1a3   :  { %v2217_v42 = vpop.eup %2216 }
 0x1a4   :  { %v2934_v57 = vmul.f32 %v2217_v42, %v862_v12 }
 0x1a6   :  { %3284 = vst [vmem:[#allocation21_spill] sm:$0xff] %v2934_v57  ;;  %v882_v29 = vsub.f32 %v2934_v57, %v880_v17 }
 0x1a8   :  { %v883_v25 = vmul.f32 %v882_v29, %v2879_v31 }
 0x1aa   :  { %v885_v36 = vrot.slane %v883_v25, 4 }
 0x1ac   :  { %v2939_v28 = vadd.f32 %v885_v36, %v2890_v23 }
 0x1ae   :  { %v905_v43 = vpack.c.bf16 %v2939_v28, %v2939_v28 }
 0x1b0   :  { %914 = vmatmul.bf16.vlgmr.msrb.gmra.mxu0 %v905_v43  ;;  %927 = vmatmul.bf16.vlgmr.msrb.gmra.mxu1 %v905_v43 }
 0x1b1   :  { %940 = vmatmul.bf16.vlgmr.msrb.gmra.mxu2 %v905_v43  ;;  %953 = vmatmul.bf16.vlgmr.msrb.gmra.mxu3 %v905_v43  ;;  %v874_v43 = vmul.f32 %v2931_v62, %v2879_v31 }
 0x1b2   :  { %1200 = vmatpush.bf16.msrb.mxu0 %v2614_v37  ;;  %1213 = vmatpush.bf16.msrb.mxu1 %v2616_v41 }
 0x1b3   :  { %1226 = vmatpush.bf16.msrb.mxu2 %v2618_v47  ;;  %1239 = vmatpush.bf16.msrb.mxu3 %v2621_v48 }
 0x1b6   :  { %1201 = vmatpush.bf16.msrb.mxu0 %v2623_v49  ;;  %1214 = vmatpush.bf16.msrb.mxu1 %v2626_v53 }
 0x1b7   :  { %1227 = vmatpush.bf16.msrb.mxu2 %v2629_v59  ;;  %1240 = vmatpush.bf16.msrb.mxu3 %v2633_v60 }
 0x1ba   :  { %1202 = vmatpush.bf16.msrb.mxu0 %v2635_v61  ;;  %1215 = vmatpush.bf16.msrb.mxu1 %v2638_v1 }
 0x1bb   :  { %1228 = vmatpush.bf16.msrb.mxu2 %v2641_v7  ;;  %1241 = vmatpush.bf16.msrb.mxu3 %v2645_v8 }
 0x1be   :  { %1203 = vmatpush.bf16.msrb.mxu0 %v2647_v9  ;;  %1216 = vmatpush.bf16.msrb.mxu1 %v2650_v13 }
 0x1bf   :  { %1229 = vmatpush.bf16.msrb.mxu2 %v2653_v19  ;;  %1242 = vmatpush.bf16.msrb.mxu3 %v2660_v21 }
 0x1c2   :  { %1204 = vmatpush.bf16.msrb.mxu0 %v2662_v22  ;;  %1217 = vmatpush.bf16.msrb.mxu1 %v2665_v26 }
 0x1c3   :  { %1230 = vmatpush.bf16.msrb.mxu2 %v2668_v32  ;;  %1243 = vmatpush.bf16.msrb.mxu3 %v2672_v33 }
 0x1c6   :  { %1205 = vmatpush.bf16.msrb.mxu0 %v2674_v34  ;;  %1218 = vmatpush.bf16.msrb.mxu1 %v2677_v39 }
 0x1c7   :  { %1231 = vmatpush.bf16.msrb.mxu2 %v2680_v46  ;;  %1244 = vmatpush.bf16.msrb.mxu3 %v2684_v50 }
 0x1ca   :  { %1206 = vmatpush.bf16.msrb.mxu0 %v2686_v51  ;;  %1219 = vmatpush.bf16.msrb.mxu1 %v2689_v56 }
 0x1cb   :  { %1232 = vmatpush.bf16.msrb.mxu2 %v2692_v2  ;;  %1245 = vmatpush.bf16.msrb.mxu3 %v2696_v3 }
 0x1ce   :  { %1207 = vmatpush.bf16.msrb.mxu0 %v2698_v4  ;;  %1220 = vmatpush.bf16.msrb.mxu1 %v2701_v10 }
 0x1cf   :  { %1233 = vmatpush.bf16.msrb.mxu2 %v2709_v15  ;;  %1246 = vmatpush.bf16.msrb.mxu3 %v2713_v16 }
 0x22d   :  { %v915_v23 = vpop.f32.mrf.mxu0  ;;  %v928_v55 = vpop.f32.mrf.mxu1 }
 0x22e   :  { %v958_v30 = vadd.f32 %v915_v23, %v3285_v63  ;;  %v959_v38 = vadd.f32 %v928_v55, %v3286_v58 }
 0x230   :  { %v2098_v20 = vmul.f32 -1.442695, %v958_v30  ;;  %v2099_v6 = vmul.f32 -1.442695, %v959_v38 }
 0x232   :  { %2218 = vpow2.f32 %v2098_v20 }
 0x233   :  { %2220 = vpow2.f32 %v2099_v6  ;;  %v876_v6 = vrot.slane %v874_v43, 4 }
 0x234   :  { %v941_v35 = vpop.f32.mrf.mxu2  ;;  %v954_v54 = vpop.f32.mrf.mxu3 }
 0x235   :  { %v960_v5 = vadd.f32 %v941_v35, %v2835_v27  ;;  %v917_v11 = vpop.f32.mrf.mxu0  ;;  %v930_v24 = vpop.f32.mrf.mxu1  ;;  %v961_v23 = vadd.f32 %v954_v54, %v2843_v52  ;;  %v878_v43 = vadd.f32 %v876_v6, %v2882_v44 }
 0x237   :  { %v2100_v40 = vmul.f32 -1.442695, %v960_v5 }
 0x238   :  { %v2219_v14 = vpop.eup %2218 }
 0x239   :  { %v2221_v0 = vpop.eup %2220  ;;  %v971_v45 = vadd.f32 1.0, %v2219_v14  ;;  %2222 = vpow2.f32 %v2100_v40 }
 0x23a   :  { %v972_v42 = vadd.f32 1.0, %v2221_v0 }
 0x23b   :  { %2224 = vrcp.f32 %v971_v45  ;;  %v985_v5 = vand.u32 2147483648, %v971_v45  ;;  %v983_v40 = vand.u32 2147483647, %v971_v45  ;;  %vm979_vm15 = vweird.f32 %v971_v45 }
 0x23c   :  { %2226 = vrcp.f32 %v972_v42  ;;  %v943_v12 = vpop.f32.mrf.mxu2  ;;  %v956_v17 = vpop.f32.mrf.mxu3  ;;  %v1000_v11 = vand.u32 2147483648, %v972_v42  ;;  %v998_v0 = vand.u32 2147483647, %v972_v42  ;;  %vm994_vm1 = vweird.f32 %v972_v42 }
 0x23d   :  { %v986_v54 = vor.u32 1.1754944e-38, %v985_v5  ;;  %vm984_vm4 = vcmp.eq.f32.partialorder %v983_v40, 8.507059e+37  ;;  %v2985_v5 = vld [vmem:[%s3241_s1 + $0x8] sm:$0xff] }
 0x23e   :  { %vm999_vm5 = vcmp.eq.f32.partialorder %v998_v0, 8.507059e+37 }
 0x23f   :  { %v2223_v29 = vpop.eup %2222 }
 0x240   :  { %v973_v25 = vadd.f32 1.0, %v2223_v29  ;;  %v1001_v29 = vor.u32 1.1754944e-38, %v1000_v11 }
 0x241   :  { %v2225_v36 = vpop.eup %2224 }
 0x242   :  { %v2227_v55 = vpop.eup %2226  ;;  %v975_v30 = vmul.f32 %v2225_v36, %v971_v45  ;;  %2228 = vrcp.f32 %v973_v25  ;;  %vm980_vm13 = vweird.f32 %v2225_v36  ;;  %v1015_v44 = vand.u32 2147483648, %v973_v25 }
 0x243   :  { %v990_v38 = vmul.f32 %v2227_v55, %v972_v42  ;;  %2230 = vtanh.f32 %v961_v23  ;;  %vm995_vm14 = vweird.f32 %v2227_v55  ;;  %vm981_vm2 = vmor %vm979_vm15, %vm980_vm13  ;;  %vm1009_vm7 = vweird.f32 %v973_v25 }
 0x244   :  { %v976_v20 = vsub.f32 1.0, %v975_v30  ;;  %vm996_vm3 = vmor %vm994_vm1, %vm995_vm14  ;;  %v1013_v6 = vand.u32 2147483647, %v973_v25  ;;  %v1016_v40 = vor.u32 1.1754944e-38, %v1015_v44 }
 0x245   :  { %v991_v35 = vsub.f32 1.0, %v990_v38 }
 0x246   :  { %v977_v24 = vmul.f32 %v2225_v36, %v976_v20  ;;  %vm1014_vm9 = vcmp.eq.f32.partialorder %v1013_v6, 8.507059e+37 }
 0x247   :  { %v992_v14 = vmul.f32 %v2227_v55, %v991_v35 }
 0x248   :  { %v2229_v12 = vpop.eup %2228  ;;  %v978_v31 = vadd.f32 %v2225_v36, %v977_v24 }
 0x249   :  { %v1005_v62 = vmul.f32 %v2229_v12, %v973_v25  ;;  %v993_v17 = vadd.f32 %v2227_v55, %v992_v14  ;;  %v2231_v30 = vpop.eup %2230  ;;  %vm1010_vm6 = vweird.f32 %v2229_v12 }
 0x24a   :  { %v982_v23 = vsel %vm981_vm2, %v2225_v36, %v978_v31  ;;  %vm1011_vm8 = vmor %vm1009_vm7, %vm1010_vm6 }
 0x24b   :  { %v1006_v38 = vsub.f32 1.0, %v1005_v62  ;;  %v987_v20 = vsel %vm984_vm4, %v986_v54, %v982_v23  ;;  %v997_v35 = vsel %vm996_vm3, %v2227_v55, %v993_v17 }
 0x24c   :  { %v1002_v18 = vsel %vm999_vm5, %v1001_v29, %v997_v35  ;;  %v1021_v57 = vmul.f32 %v2231_v30, %v987_v20 }
 0x24d   :  { %v1007_v24 = vmul.f32 %v2229_v12, %v1006_v38  ;;  %v1020_v45 = vmul.f32 %v1002_v18, %v878_v43 }
 0x24f   :  { %v1022_v42 = vadd.f32 %v1021_v57, %v1020_v45  ;;  %v1008_v52 = vadd.f32 %v2229_v12, %v1007_v24 }
 0x251   :  { %2232 = vtanh.f32 %v1022_v42  ;;  %v1025_v36 = vsub.f32 %v1022_v42, %v878_v43  ;;  %v1012_v11 = vsel %vm1011_vm8, %v2229_v12, %v1008_v52 }
 0x252   :  { %v1017_v57 = vsel %vm1014_vm9, %v1016_v40, %v1012_v11 }
 0x253   :  { %v1026_v55 = vmul.f32 %v1025_v36, %v2985_v5 }
 0x255   :  { %v2988_v14 = vadd.f32 %v1026_v55, %v878_v43 }
 0x257   :  { %v2233_v18 = vpop.eup %2232 }
 0x258   :  { %v2990_v0 = vmul.f32 %v2233_v18, %v1017_v57 }
 0x25a   :  { %3287 = vst [vmem:[#allocation11_spill] sm:$0xff] %v2990_v0  ;;  %v1028_v31 = vsub.f32 %v2990_v0, %v2939_v28 }
 0x25c   :  { %v1029_v62 = vmul.f32 %v1028_v31, %v2985_v5 }
 0x25e   :  { %v2996_v54 = vadd.f32 %v1029_v62, %v2939_v28  ;;  %v3288_v62 = vld [vmem:[#allocation17_spill] sm:$0xff] }
 0x260   :  { %v1032_v25 = vpack.c.bf16 %v2996_v54, %v2996_v54 }
 0x262   :  { %1041 = vmatmul.bf16.vlgmr.msra.gmra.mxu0 %v1032_v25  ;;  %1054 = vmatmul.bf16.vlgmr.msra.gmra.mxu1 %v1032_v25 }
 0x263   :  { %1067 = vmatmul.bf16.vlgmr.msra.gmra.mxu2 %v1032_v25  ;;  %1080 = vmatmul.bf16.vlgmr.msra.gmra.mxu3 %v1032_v25 }
 0x264   :  { %1327 = vmatpush.bf16.msra.mxu0 %v2614_v37  ;;  %1340 = vmatpush.bf16.msra.mxu1 %v2616_v41 }
 0x265   :  { %1353 = vmatpush.bf16.msra.mxu2 %v2618_v47  ;;  %1366 = vmatpush.bf16.msra.mxu3 %v2621_v48 }
 0x268   :  { %1328 = vmatpush.bf16.msra.mxu0 %v2623_v49  ;;  %1341 = vmatpush.bf16.msra.mxu1 %v2626_v53 }
 0x269   :  { %1354 = vmatpush.bf16.msra.mxu2 %v2629_v59  ;;  %1367 = vmatpush.bf16.msra.mxu3 %v2633_v60 }
 0x26c   :  { %1329 = vmatpush.bf16.msra.mxu0 %v2635_v61  ;;  %1342 = vmatpush.bf16.msra.mxu1 %v2638_v1 }
 0x26d   :  { %1355 = vmatpush.bf16.msra.mxu2 %v2641_v7  ;;  %1368 = vmatpush.bf16.msra.mxu3 %v2645_v8 }
 0x270   :  { %1330 = vmatpush.bf16.msra.mxu0 %v2647_v9  ;;  %1343 = vmatpush.bf16.msra.mxu1 %v2650_v13 }
 0x271   :  { %1356 = vmatpush.bf16.msra.mxu2 %v2653_v19  ;;  %1369 = vmatpush.bf16.msra.mxu3 %v2660_v21 }
 0x274   :  { %1331 = vmatpush.bf16.msra.mxu0 %v2662_v22  ;;  %1344 = vmatpush.bf16.msra.mxu1 %v2665_v26 }
 0x275   :  { %1357 = vmatpush.bf16.msra.mxu2 %v2668_v32  ;;  %1370 = vmatpush.bf16.msra.mxu3 %v2672_v33 }
 0x278   :  { %1332 = vmatpush.bf16.msra.mxu0 %v2674_v34  ;;  %1345 = vmatpush.bf16.msra.mxu1 %v2677_v39 }
 0x279   :  { %1358 = vmatpush.bf16.msra.mxu2 %v2680_v46  ;;  %1371 = vmatpush.bf16.msra.mxu3 %v2684_v50 }
 0x27c   :  { %1333 = vmatpush.bf16.msra.mxu0 %v2686_v51  ;;  %1346 = vmatpush.bf16.msra.mxu1 %v2689_v56 }
 0x27d   :  { %1359 = vmatpush.bf16.msra.mxu2 %v2692_v2  ;;  %1372 = vmatpush.bf16.msra.mxu3 %v2696_v3 }
 0x280   :  { %1334 = vmatpush.bf16.msra.mxu0 %v2698_v4  ;;  %1347 = vmatpush.bf16.msra.mxu1 %v2701_v10 }
 0x281   :  { %1360 = vmatpush.bf16.msra.mxu2 %v2709_v15  ;;  %1373 = vmatpush.bf16.msra.mxu3 %v2713_v16 }
 0x2df   :  { %v1042_v52 = vpop.f32.mrf.mxu0  ;;  %v1055_v28 = vpop.f32.mrf.mxu1 }
 0x2e0   :  { %v1089_v12 = vrot.slane %v1042_v52, 4  ;;  %v1090_v17 = vrot.slane %v1055_v28, 4 }
 0x2e2   :  { %v1097_v29 = vadd.f32 %v1089_v12, %v3285_v63  ;;  %v1098_v43 = vadd.f32 %v1090_v17, %v3286_v58 }
 0x2e4   :  { %v2101_v23 = vmul.f32 -1.442695, %v1097_v29  ;;  %v2102_v30 = vmul.f32 -1.442695, %v1098_v43 }
 0x2e6   :  { %2234 = vpow2.f32 %v2101_v23  ;;  %v1068_v38 = vpop.f32.mrf.mxu2  ;;  %v1081_v20 = vpop.f32.mrf.mxu3 }
 0x2e7   :  { %2236 = vpow2.f32 %v2102_v30  ;;  %v1091_v35 = vrot.slane %v1068_v38, 4  ;;  %v1044_v24 = vpop.f32.mrf.mxu0  ;;  %v1057_v45 = vpop.f32.mrf.mxu1  ;;  %v1092_v58 = vrot.slane %v1081_v20, 4 }
 0x2e9   :  { %v1099_v42 = vadd.f32 %v1091_v35, %v2835_v27  ;;  %v1100_v25 = vadd.f32 %v1092_v58, %v3288_v62 }
 0x2eb   :  { %v2103_v44 = vmul.f32 -1.442695, %v1099_v42 }
 0x2ec   :  { %v2235_v36 = vpop.eup %2234 }
 0x2ed   :  { %v2237_v6 = vpop.eup %2236  ;;  %v1110_v55 = vadd.f32 1.0, %v2235_v36  ;;  %2238 = vpow2.f32 %v2103_v44 }
 0x2ee   :  { %v1111_v11 = vadd.f32 1.0, %v2237_v6  ;;  %v1070_v63 = vpop.f32.mrf.mxu2  ;;  %v1083_v40 = vpop.f32.mrf.mxu3 }
 0x2ef   :  { %2240 = vrcp.f32 %v1110_v55  ;;  %v1124_v29 = vand.u32 2147483648, %v1110_v55  ;;  %v1122_v30 = vand.u32 2147483647, %v1110_v55  ;;  %vm1118_vm12 = vweird.f32 %v1110_v55 }
 0x2f0   :  { %2242 = vrcp.f32 %v1111_v11  ;;  %v1139_v43 = vand.u32 2147483648, %v1111_v11  ;;  %v1137_v20 = vand.u32 2147483647, %v1111_v11  ;;  %vm1133_vm13 = vweird.f32 %v1111_v11 }
 0x2f1   :  { %v1125_v42 = vor.u32 1.1754944e-38, %v1124_v29  ;;  %vm1123_vm1 = vcmp.eq.f32.partialorder %v1122_v30, 8.507059e+37  ;;  %v1160_v63 = vrot.slane %v2988_v14, 4 }
 0x2f2   :  { %v1140_v36 = vor.u32 1.1754944e-38, %v1139_v43  ;;  %vm1138_vm2 = vcmp.eq.f32.partialorder %v1137_v20, 8.507059e+37 }
 0x2f3   :  { %v2239_v18 = vpop.eup %2238 }
 0x2f4   :  { %v1112_v57 = vadd.f32 1.0, %v2239_v18 }
 0x2f5   :  { %v2241_v31 = vpop.eup %2240 }
 0x2f6   :  { %v2243_v52 = vpop.eup %2242  ;;  %v1114_v28 = vmul.f32 %v2241_v31, %v1110_v55  ;;  %2244 = vrcp.f32 %v1112_v57  ;;  %vm1119_vm10 = vweird.f32 %v2241_v31  ;;  %vm1148_vm4 = vweird.f32 %v1112_v57 }
 0x2f7   :  { %v1129_v27 = vmul.f32 %v2243_v52, %v1111_v11  ;;  %2246 = vtanh.f32 %v1100_v25  ;;  %vm1134_vm11 = vweird.f32 %v2243_v52  ;;  %vm1120_vm14 = vmor %vm1118_vm12, %vm1119_vm10 }
 0x2f8   :  { %v1115_v12 = vsub.f32 1.0, %v1114_v28  ;;  %vm1135_vm15 = vmor %vm1133_vm13, %vm1134_vm11 }
 0x2f9   :  { %v1130_v17 = vsub.f32 1.0, %v1129_v27 }
 0x2fa   :  { %v1116_v23 = vmul.f32 %v2241_v31, %v1115_v12 }
 0x2fb   :  { %v1131_v38 = vmul.f32 %v2243_v52, %v1130_v17  ;;  %v1154_v17 = vand.u32 2147483648, %v1112_v57 }
 0x2fc   :  { %v2245_v35 = vpop.eup %2244  ;;  %v1117_v24 = vadd.f32 %v2241_v31, %v1116_v23 }
 0x2fd   :  { %v1144_v45 = vmul.f32 %v2245_v35, %v1112_v57  ;;  %v1132_v44 = vadd.f32 %v2243_v52, %v1131_v38  ;;  %v2247_v40 = vpop.eup %2246  ;;  %vm1149_vm3 = vweird.f32 %v2245_v35  ;;  %v1155_v23 = vor.u32 1.1754944e-38, %v1154_v17 }
 0x2fe   :  { %v1121_v6 = vsel %vm1120_vm14, %v2241_v31, %v1117_v24  ;;  %v1152_v31 = vand.u32 2147483647, %v1112_v57  ;;  %vm1150_vm5 = vmor %vm1148_vm4, %vm1149_vm3  ;;  %v1174_v38 = vrot.slane %v2996_v54, 4 }
 0x2ff   :  { %v1145_v58 = vsub.f32 1.0, %v1144_v45  ;;  %v1126_v18 = vsel %vm1123_vm1, %v1125_v42, %v1121_v6  ;;  %v1136_v62 = vsel %vm1135_vm15, %v2243_v52, %v1132_v44 }
 0x300   :  { %v1141_v25 = vsel %vm1138_vm2, %v1140_v36, %v1136_v62  ;;  %v1163_v28 = vmul.f32 %v2247_v40, %v1126_v18  ;;  %vm1153_vm6 = vcmp.eq.f32.partialorder %v1152_v31, 8.507059e+37  ;;  %v3289_v36 = vld [vmem:[#allocation9_spill] sm:$0xff] }
 0x301   :  { %v1146_v27 = vmul.f32 %v2245_v35, %v1145_v58  ;;  %v1162_v55 = vmul.f32 %v1160_v63, %v1141_v25 }
 0x303   :  { %v1164_v11 = vadd.f32 %v1163_v28, %v1162_v55  ;;  %v1147_v12 = vadd.f32 %v2245_v35, %v1146_v27  ;;  %v3291_v28 = vld [vmem:[#allocation13_spill] sm:$0xff] }
 0x305   :  { %2248 = vtanh.f32 %v1164_v11  ;;  %v3037_v29 = vsub.f32 %v1164_v11, %v1160_v63  ;;  %v1151_v43 = vsel %vm1150_vm5, %v2245_v35, %v1147_v12  ;;  %v3290_v63 = vld [vmem:[#allocation10_spill] sm:$0xff] }
 0x306   :  { %v1156_v52 = vsel %vm1153_vm6, %v1155_v23, %v1151_v43 }
 0x30b   :  { %v2249_v30 = vpop.eup %2248 }
 0x30c   :  { %v3040_v20 = vmul.f32 %v2249_v30, %v1156_v52 }
 0x30e   :  { %v1176_v24 = vsub.f32 %v3040_v20, %v1174_v38 }
 0x310   :  { %v1177_v45 = vmul.f32 %v1176_v24, %v2985_v5 }
 0x312   :  { %v1179_v42 = vrot.slane %v1177_v45, 4 }
 0x314   :  { %v3045_v44 = vadd.f32 %v1179_v42, %v2996_v54  ;;  %v1168_v42 = vmul.f32 %v3037_v29, %v2985_v5 }
 0x316   :  { %v1199_v57 = vpack.c.bf16 %v3045_v44, %v3045_v44 }
 0x318   :  { %1208 = vmatmul.bf16.vlgmr.msrb.gmra.mxu0 %v1199_v57  ;;  %1221 = vmatmul.bf16.vlgmr.msrb.gmra.mxu1 %v1199_v57 }
 0x319   :  { %1234 = vmatmul.bf16.vlgmr.msrb.gmra.mxu2 %v1199_v57  ;;  %1247 = vmatmul.bf16.vlgmr.msrb.gmra.mxu3 %v1199_v57  ;;  %v3292_v57 = vld [vmem:[#allocation14_spill] sm:$0xff] }
 0x31a   :  { %1494 = vmatpush.bf16.msrb.mxu0 %v2614_v37  ;;  %1507 = vmatpush.bf16.msrb.mxu1 %v2616_v41 }
 0x31b   :  { %1520 = vmatpush.bf16.msrb.mxu2 %v2618_v47  ;;  %1533 = vmatpush.bf16.msrb.mxu3 %v2621_v48 }
 0x31e   :  { %1495 = vmatpush.bf16.msrb.mxu0 %v2623_v49  ;;  %1508 = vmatpush.bf16.msrb.mxu1 %v2626_v53 }
 0x31f   :  { %1521 = vmatpush.bf16.msrb.mxu2 %v2629_v59  ;;  %1534 = vmatpush.bf16.msrb.mxu3 %v2633_v60 }
 0x322   :  { %1496 = vmatpush.bf16.msrb.mxu0 %v2635_v61  ;;  %1509 = vmatpush.bf16.msrb.mxu1 %v2638_v1 }
 0x323   :  { %1522 = vmatpush.bf16.msrb.mxu2 %v2641_v7  ;;  %1535 = vmatpush.bf16.msrb.mxu3 %v2645_v8 }
 0x326   :  { %1497 = vmatpush.bf16.msrb.mxu0 %v2647_v9  ;;  %1510 = vmatpush.bf16.msrb.mxu1 %v2650_v13 }
 0x327   :  { %1523 = vmatpush.bf16.msrb.mxu2 %v2653_v19  ;;  %1536 = vmatpush.bf16.msrb.mxu3 %v2660_v21 }
 0x32a   :  { %1498 = vmatpush.bf16.msrb.mxu0 %v2662_v22  ;;  %1511 = vmatpush.bf16.msrb.mxu1 %v2665_v26 }
 0x32b   :  { %1524 = vmatpush.bf16.msrb.mxu2 %v2668_v32  ;;  %1537 = vmatpush.bf16.msrb.mxu3 %v2672_v33 }
 0x32e   :  { %1499 = vmatpush.bf16.msrb.mxu0 %v2674_v34  ;;  %1512 = vmatpush.bf16.msrb.mxu1 %v2677_v39 }
 0x32f   :  { %1525 = vmatpush.bf16.msrb.mxu2 %v2680_v46  ;;  %1538 = vmatpush.bf16.msrb.mxu3 %v2684_v50 }
 0x332   :  { %1500 = vmatpush.bf16.msrb.mxu0 %v2686_v51  ;;  %1513 = vmatpush.bf16.msrb.mxu1 %v2689_v56 }
 0x333   :  { %1526 = vmatpush.bf16.msrb.mxu2 %v2692_v2  ;;  %1539 = vmatpush.bf16.msrb.mxu3 %v2696_v3 }
 0x336   :  { %1501 = vmatpush.bf16.msrb.mxu0 %v2698_v4  ;;  %1514 = vmatpush.bf16.msrb.mxu1 %v2701_v10 }
 0x337   :  { %1527 = vmatpush.bf16.msrb.mxu2 %v2709_v15  ;;  %1540 = vmatpush.bf16.msrb.mxu3 %v2713_v16 }
 0x395   :  { %v1209_v54 = vpop.f32.mrf.mxu0  ;;  %v1222_v35 = vpop.f32.mrf.mxu1 }
 0x396   :  { %v1252_v6 = vadd.f32 %v1209_v54, %v3289_v36  ;;  %v1253_v40 = vadd.f32 %v1222_v35, %v3290_v63 }
 0x398   :  { %v2104_v58 = vmul.f32 -1.442695, %v1252_v6  ;;  %v2105_v18 = vmul.f32 -1.442695, %v1253_v40 }
 0x39a   :  { %2250 = vpow2.f32 %v2104_v58 }
 0x39b   :  { %2252 = vpow2.f32 %v2105_v18  ;;  %v1170_v18 = vrot.slane %v1168_v42, 4 }
 0x39c   :  { %v1235_v62 = vpop.f32.mrf.mxu2  ;;  %v1248_v25 = vpop.f32.mrf.mxu3 }
 0x39d   :  { %v1254_v27 = vadd.f32 %v1235_v62, %v3291_v28  ;;  %v1211_v55 = vpop.f32.mrf.mxu0  ;;  %v1224_v11 = vpop.f32.mrf.mxu1  ;;  %v1255_v54 = vadd.f32 %v1248_v25, %v3292_v57 }
 0x39f   :  { %v2106_v12 = vmul.f32 -1.442695, %v1254_v27 }
 0x3a0   :  { %v2251_v17 = vpop.eup %2250 }
 0x3a1   :  { %v2253_v31 = vpop.eup %2252  ;;  %v1265_v43 = vadd.f32 1.0, %v2251_v17  ;;  %2254 = vpow2.f32 %v2106_v12 }
 0x3a2   :  { %v1266_v23 = vadd.f32 1.0, %v2253_v31 }
 0x3a3   :  { %2256 = vrcp.f32 %v1265_v43  ;;  %v1279_v27 = vand.u32 2147483648, %v1265_v43  ;;  %v1277_v12 = vand.u32 2147483647, %v1265_v43  ;;  %vm1273_vm9 = vweird.f32 %v1265_v43 }
 0x3a4   :  { %2258 = vrcp.f32 %v1266_v23  ;;  %v1237_v30 = vpop.f32.mrf.mxu2  ;;  %v1250_v52 = vpop.f32.mrf.mxu3  ;;  %v1294_v55 = vand.u32 2147483648, %v1266_v23  ;;  %v1292_v31 = vand.u32 2147483647, %v1266_v23  ;;  %vm1288_vm10 = vweird.f32 %v1266_v23 }
 0x3a5   :  { %v1280_v52 = vor.u32 1.1754944e-38, %v1279_v27  ;;  %vm1278_vm13 = vcmp.eq.f32.partialorder %v1277_v12, 8.507059e+37  ;;  %v3091_v27 = vld [vmem:[%s3241_s1 + $0x10] sm:$0xff] }
 0x3a6   :  { %v1295_v42 = vor.u32 1.1754944e-38, %v1294_v55  ;;  %vm1293_vm14 = vcmp.eq.f32.partialorder %v1292_v31, 8.507059e+37 }
 0x3a7   :  { %v2255_v38 = vpop.eup %2254 }
 0x3a8   :  { %v1267_v24 = vadd.f32 1.0, %v2255_v38 }
 0x3a9   :  { %v2257_v45 = vpop.eup %2256 }
 0x3aa   :  { %v2259_v35 = vpop.eup %2258  ;;  %v1269_v6 = vmul.f32 %v2257_v45, %v1265_v43  ;;  %2260 = vrcp.f32 %v1267_v24  ;;  %vm1274_vm7 = vweird.f32 %v2257_v45  ;;  %vm1303_vm1 = vweird.f32 %v1267_v24 }
 0x3ab   :  { %v1284_v40 = vmul.f32 %v2259_v35, %v1266_v23  ;;  %2262 = vtanh.f32 %v1255_v54  ;;  %vm1289_vm8 = vweird.f32 %v2259_v35  ;;  %vm1275_vm11 = vmor %vm1273_vm9, %vm1274_vm7 }
 0x3ac   :  { %v1270_v58 = vsub.f32 1.0, %v1269_v6  ;;  %vm1290_vm12 = vmor %vm1288_vm10, %vm1289_vm8  ;;  %v1172_v6 = vadd.f32 %v1170_v18, %v2988_v14  ;;  %v1309_v14 = vand.u32 2147483648, %v1267_v24  ;;  %v1307_v18 = vand.u32 2147483647, %v1267_v24 }
 0x3ad   :  { %v1285_v62 = vsub.f32 1.0, %v1284_v40 }
 0x3ae   :  { %v1271_v11 = vmul.f32 %v2257_v45, %v1270_v58  ;;  %vm1308_vm3 = vcmp.eq.f32.partialorder %v1307_v18, 8.507059e+37 }
 0x3af   :  { %v1286_v17 = vmul.f32 %v2259_v35, %v1285_v62 }
 0x3b0   :  { %v2261_v30 = vpop.eup %2260  ;;  %v1272_v29 = vadd.f32 %v2257_v45, %v1271_v11 }
 0x3b1   :  { %v1299_v25 = vmul.f32 %v2261_v30, %v1267_v24  ;;  %v1287_v38 = vadd.f32 %v2259_v35, %v1286_v17  ;;  %v2263_v40 = vpop.eup %2262  ;;  %vm1304_vm15 = vweird.f32 %v2261_v30 }
 0x3b2   :  { %v1276_v54 = vsel %vm1275_vm11, %v2257_v45, %v1272_v29  ;;  %vm1305_vm2 = vmor %vm1303_vm1, %vm1304_vm15  ;;  %vm1797_vm1 = vcmask 1043456  }
 0x3b3   :  { %v1300_v58 = vsub.f32 1.0, %v1299_v25  ;;  %v1281_v0 = vsel %vm1278_vm13, %v1280_v52, %v1276_v54  ;;  %v1291_v62 = vsel %vm1290_vm12, %v2259_v35, %v1287_v38 }
 0x3b4   :  { %v1296_v57 = vsel %vm1293_vm14, %v1295_v42, %v1291_v62  ;;  %v1315_v28 = vmul.f32 %v2263_v40, %v1281_v0  ;;  %v1310_v0 = vor.u32 1.1754944e-38, %v1309_v14 }
 0x3b5   :  { %v1301_v11 = vmul.f32 %v2261_v30, %v1300_v58  ;;  %v1314_v43 = vmul.f32 %v1296_v57, %v1172_v6 }
 0x3b7   :  { %v1316_v23 = vadd.f32 %v1315_v28, %v1314_v43  ;;  %v1302_v63 = vadd.f32 %v2261_v30, %v1301_v11  ;;  %v1182_v28 = vmul.f32 %v3040_v20, %v2985_v5 }
 0x3b9   :  { %2264 = vtanh.f32 %v1316_v23  ;;  %v1319_v45 = vsub.f32 %v1316_v23, %v1172_v6  ;;  %v1306_v55 = vsel %vm1305_vm2, %v2261_v30, %v1302_v63  ;;  %v1782_v29 = vrot.slane %v1182_v28, 4 }
 0x3ba   :  { %v1311_v17 = vsel %vm1308_vm3, %v1310_v0, %v1306_v55 }
 0x3bb   :  { %v1320_v35 = vmul.f32 %v1319_v45, %v3091_v27 }
 0x3bd   :  { %v3094_v12 = vadd.f32 %v1320_v35, %v1172_v6 }
 0x3bf   :  { %v2265_v57 = vpop.eup %2264 }
 0x3c0   :  { %v1318_v31 = vmul.f32 %v2265_v57, %v1311_v17 }
 0x3c2   :  { %v1322_v25 = vsub.f32 %v1318_v31, %v3045_v44  ;;  %v1325_v52 = vmul.f32 %v1318_v31, %v3091_v27 }
 0x3c4   :  { %v1323_v24 = vmul.f32 %v1322_v25, %v3091_v27  ;;  %v1778_v38 = vrot.slane %v1325_v52, 4  ;;  %v3103_v63 = vsel %vm392_vm0, %v1325_v52, %v1782_v29 }
 0x3c6   :  { %v3106_v30 = vadd.f32 %v1323_v24, %v3045_v44  ;;  %v3110_v20 = vsel %vm392_vm0, %v1182_v28, %v1778_v38  ;;  %v1454_v28 = vrot.slane %v3094_v12, 4 }
 0x3c8   :  { %v1326_v6 = vpack.c.bf16 %v3106_v30, %v3106_v30 }
 0x3ca   :  { %1335 = vmatmul.bf16.vlgmr.msra.gmra.mxu0 %v1326_v6  ;;  %1348 = vmatmul.bf16.vlgmr.msra.gmra.mxu1 %v1326_v6 }
 0x3cb   :  { %1361 = vmatmul.bf16.vlgmr.msra.gmra.mxu2 %v1326_v6  ;;  %1374 = vmatmul.bf16.vlgmr.msra.gmra.mxu3 %v1326_v6 }
 0x3cc   :  { %1621 = vmatpush.bf16.msra.mxu0 %v2614_v37  ;;  %1634 = vmatpush.bf16.msra.mxu1 %v2616_v41 }
 0x3cd   :  { %1647 = vmatpush.bf16.msra.mxu2 %v2618_v47  ;;  %1660 = vmatpush.bf16.msra.mxu3 %v2621_v48 }
 0x3d0   :  { %1622 = vmatpush.bf16.msra.mxu0 %v2623_v49  ;;  %1635 = vmatpush.bf16.msra.mxu1 %v2626_v53  ;;  %v3294_v53 = vld [vmem:[#allocation10_spill] sm:$0xff] }
 0x3d1   :  { %1648 = vmatpush.bf16.msra.mxu2 %v2629_v59  ;;  %1661 = vmatpush.bf16.msra.mxu3 %v2633_v60 }
 0x3d4   :  { %1623 = vmatpush.bf16.msra.mxu0 %v2635_v61  ;;  %1636 = vmatpush.bf16.msra.mxu1 %v2638_v1 }
 0x3d5   :  { %1649 = vmatpush.bf16.msra.mxu2 %v2641_v7  ;;  %1662 = vmatpush.bf16.msra.mxu3 %v2645_v8 }
 0x3d8   :  { %1624 = vmatpush.bf16.msra.mxu0 %v2647_v9  ;;  %1637 = vmatpush.bf16.msra.mxu1 %v2650_v13 }
 0x3d9   :  { %1650 = vmatpush.bf16.msra.mxu2 %v2653_v19  ;;  %1663 = vmatpush.bf16.msra.mxu3 %v2660_v21  ;;  %v3295_v19 = vld [vmem:[#allocation13_spill] sm:$0xff] }
 0x3dc   :  { %1625 = vmatpush.bf16.msra.mxu0 %v2662_v22  ;;  %1638 = vmatpush.bf16.msra.mxu1 %v2665_v26 }
 0x3dd   :  { %1651 = vmatpush.bf16.msra.mxu2 %v2668_v32  ;;  %1664 = vmatpush.bf16.msra.mxu3 %v2672_v33 }
 0x3e0   :  { %1626 = vmatpush.bf16.msra.mxu0 %v2674_v34  ;;  %1639 = vmatpush.bf16.msra.mxu1 %v2677_v39 }
 0x3e1   :  { %1652 = vmatpush.bf16.msra.mxu2 %v2680_v46  ;;  %1665 = vmatpush.bf16.msra.mxu3 %v2684_v50 }
 0x3e4   :  { %1627 = vmatpush.bf16.msra.mxu0 %v2686_v51  ;;  %1640 = vmatpush.bf16.msra.mxu1 %v2689_v56 }
 0x3e5   :  { %1653 = vmatpush.bf16.msra.mxu2 %v2692_v2  ;;  %1666 = vmatpush.bf16.msra.mxu3 %v2696_v3  ;;  %v3296_v3 = vld [vmem:[#allocation14_spill] sm:$0xff] }
 0x3e8   :  { %1628 = vmatpush.bf16.msra.mxu0 %v2698_v4  ;;  %1641 = vmatpush.bf16.msra.mxu1 %v2701_v10 }
 0x3e9   :  { %1654 = vmatpush.bf16.msra.mxu2 %v2709_v15  ;;  %1667 = vmatpush.bf16.msra.mxu3 %v2713_v16 }
 0x447   :  { %v1336_v37 = vpop.f32.mrf.mxu0  ;;  %v1349_v41 = vpop.f32.mrf.mxu1 }
 0x448   :  { %v1383_v47 = vrot.slane %v1336_v37, 4  ;;  %v1384_v48 = vrot.slane %v1349_v41, 4 }
 0x44a   :  { %v1391_v49 = vadd.f32 %v1383_v47, %v3289_v36  ;;  %v1392_v59 = vadd.f32 %v1384_v48, %v3294_v53 }
 0x44c   :  { %v2107_v60 = vmul.f32 -1.442695, %v1391_v49  ;;  %v2108_v61 = vmul.f32 -1.442695, %v1392_v59  ;;  %v3297_v59 = vld [vmem:[#allocation11_spill] sm:$0xff] }
 0x44e   :  { %2266 = vpow2.f32 %v2107_v60  ;;  %v1362_v1 = vpop.f32.mrf.mxu2  ;;  %v1375_v7 = vpop.f32.mrf.mxu3  ;;  %v1031_v60 = vmul.f32 %v3297_v59, %v2985_v5 }
 0x44f   :  { %2268 = vpow2.f32 %v2108_v61  ;;  %v1385_v8 = vrot.slane %v1362_v1, 4  ;;  %v1338_v9 = vpop.f32.mrf.mxu0  ;;  %v1351_v13 = vpop.f32.mrf.mxu1  ;;  %v1386_v50 = vrot.slane %v1375_v7, 4  ;;  %v1468_v7 = vrot.slane %v3106_v30, 4 }
 0x450   :  { %v1786_v9 = vrot.slane %v1031_v60, 4 }
 0x451   :  { %v1393_v21 = vadd.f32 %v1385_v8, %v3295_v19  ;;  %v1394_v4 = vadd.f32 %v1386_v50, %v3296_v3 }
 0x453   :  { %v2109_v22 = vmul.f32 -1.442695, %v1393_v21 }
 0x454   :  { %v2267_v26 = vpop.eup %2266 }
 0x455   :  { %v2269_v32 = vpop.eup %2268  ;;  %v1404_v33 = vadd.f32 1.0, %v2267_v26  ;;  %2270 = vpow2.f32 %v2109_v22 }
 0x456   :  { %v1405_v34 = vadd.f32 1.0, %v2269_v32  ;;  %v1364_v39 = vpop.f32.mrf.mxu2  ;;  %v1377_v46 = vpop.f32.mrf.mxu3 }
 0x457   :  { %2272 = vrcp.f32 %v1404_v33  ;;  %v1418_v54 = vand.u32 2147483648, %v1404_v33  ;;  %v1416_v62 = vand.u32 2147483647, %v1404_v33  ;;  %vm1412_vm6 = vweird.f32 %v1404_v33 }
 0x458   :  { %2274 = vrcp.f32 %v1405_v34  ;;  %v1433_v40 = vand.u32 2147483648, %v1405_v34  ;;  %v1431_v43 = vand.u32 2147483647, %v1405_v34  ;;  %vm1427_vm7 = vweird.f32 %v1405_v34 }
 0x459   :  { %v1419_v18 = vor.u32 1.1754944e-38, %v1418_v54  ;;  %vm1417_vm10 = vcmp.eq.f32.partialorder %v1416_v62, 8.507059e+37 }
 0x45a   :  { %v1434_v55 = vor.u32 1.1754944e-38, %v1433_v40  ;;  %vm1432_vm11 = vcmp.eq.f32.partialorder %v1431_v43, 8.507059e+37 }
 0x45b   :  { %v2271_v51 = vpop.eup %2270 }
 0x45c   :  { %v1406_v56 = vadd.f32 1.0, %v2271_v51  ;;  %v3298_v51 = vld [vmem:[#allocation15_spill] sm:$0xff] }
 0x45d   :  { %v2273_v2 = vpop.eup %2272 }
 0x45e   :  { %v2275_v10 = vpop.eup %2274  ;;  %v1408_v15 = vmul.f32 %v2273_v2, %v1404_v33  ;;  %2276 = vrcp.f32 %v1406_v56  ;;  %vm1413_vm4 = vweird.f32 %v2273_v2  ;;  %v1448_v41 = vand.u32 2147483648, %v1406_v56 }
 0x45f   :  { %v1423_v16 = vmul.f32 %v2275_v10, %v1405_v34  ;;  %2278 = vtanh.f32 %v1394_v4  ;;  %vm1428_vm5 = vweird.f32 %v2275_v10  ;;  %vm1414_vm8 = vmor %vm1412_vm6, %vm1413_vm4  ;;  %vm1442_vm13 = vweird.f32 %v1406_v56 }
 0x460   :  { %v1409_v44 = vsub.f32 1.0, %v1408_v15  ;;  %vm1429_vm9 = vmor %vm1427_vm7, %vm1428_vm5  ;;  %v1446_v48 = vand.u32 2147483647, %v1406_v56  ;;  %v1449_v53 = vor.u32 1.1754944e-38, %v1448_v41  ;;  %v3300_v15 = vld [vmem:[#allocation18_spill] sm:$0xff] }
 0x461   :  { %v1424_v36 = vsub.f32 1.0, %v1423_v16 }
 0x462   :  { %v1410_v58 = vmul.f32 %v2273_v2, %v1409_v44  ;;  %vm1447_vm15 = vcmp.eq.f32.partialorder %v1446_v48, 8.507059e+37 }
 0x463   :  { %v1425_v11 = vmul.f32 %v2275_v10, %v1424_v36 }
 0x464   :  { %v2277_v23 = vpop.eup %2276  ;;  %v1411_v14 = vadd.f32 %v2273_v2, %v1410_v58 }
 0x465   :  { %v1438_v45 = vmul.f32 %v2277_v23, %v1406_v56  ;;  %v1426_v35 = vadd.f32 %v2275_v10, %v1425_v11  ;;  %v2279_v57 = vpop.eup %2278  ;;  %vm1443_vm12 = vweird.f32 %v2277_v23 }
 0x466   :  { %v1415_v0 = vsel %vm1414_vm8, %v2273_v2, %v1411_v14  ;;  %vm1444_vm14 = vmor %vm1442_vm13, %vm1443_vm12  ;;  %v3299_v2 = vld [vmem:[#allocation16_spill] sm:$0xff] }
 0x467   :  { %v1439_v17 = vsub.f32 1.0, %v1438_v45  ;;  %v1420_v31 = vsel %vm1417_vm10, %v1419_v18, %v1415_v0  ;;  %v1430_v29 = vsel %vm1429_vm9, %v2275_v10, %v1426_v35 }
 0x468   :  { %v1435_v25 = vsel %vm1432_vm11, %v1434_v55, %v1430_v29  ;;  %v1457_v52 = vmul.f32 %v2279_v57, %v1420_v31  ;;  %v3301_v55 = vld [vmem:[#allocation19_spill] sm:$0xff] }
 0x469   :  { %v1440_v24 = vmul.f32 %v2277_v23, %v1439_v17  ;;  %v1456_v38 = vmul.f32 %v1454_v28, %v1435_v25 }
 0x46b   :  { %v1458_v6 = vadd.f32 %v1457_v52, %v1456_v38  ;;  %v1441_v37 = vadd.f32 %v2277_v23, %v1440_v24 }
 0x46d   :  { %2280 = vtanh.f32 %v1458_v6  ;;  %v1461_v47 = vsub.f32 %v1458_v6, %v1454_v28  ;;  %v1445_v49 = vsel %vm1444_vm14, %v2277_v23, %v1441_v37 }
 0x46e   :  { %v1450_v1 = vsel %vm1447_vm15, %v1449_v53, %v1445_v49 }
 0x46f   :  { %v1462_v35 = vmul.f32 %v1461_v47, %v3091_v27 }
 0x471   :  { %v1464_v29 = vrot.slane %v1462_v35, 4 }
 0x473   :  { %v2281_v61 = vpop.eup %2280 }
 0x474   :  { %v1460_v8 = vmul.f32 %v2281_v61, %v1450_v1 }
 0x476   :  { %v1470_v13 = vsub.f32 %v1460_v8, %v1468_v7  ;;  %v1476_v19 = vmul.f32 %v1460_v8, %v3091_v27 }
 0x478   :  { %v1471_v21 = vmul.f32 %v1470_v13, %v3091_v27  ;;  %v1774_v22 = vrot.slane %v1476_v19, 4  ;;  %v1788_v26 = vsel %vm392_vm0, %v1476_v19, %v1786_v9 }
 0x479   :  { %v1800_v5 = vsel %vm1797_vm1, %v3103_v63, %v1788_v26 }
 0x47a   :  { %v1473_v32 = vrot.slane %v1471_v21, 4  ;;  %v1776_v33 = vsel %vm392_vm0, %v1031_v60, %v1774_v22  ;;  %1804 = vst [vmem:[%s3247_s7 + $0x10] sm:$0xff] %v1800_v5  ;;  %v1466_v60 = vadd.f32 %v1464_v29, %v3094_v12 }
 0x47b   :  { %v1799_v34 = vsel %vm1797_vm1, %v1776_v33, %v3110_v20 }
 0x47c   :  { %v3168_v39 = vadd.f32 %v1473_v32, %v3106_v30  ;;  %1803 = vst [vmem:[%s3247_s7 + $0x8] sm:$0xff] %v1799_v34  ;;  %v3184_v32 = vld [vmem:[%s3241_s1 + $0x18] sm:$0xff] }
 0x47e   :  { %v1493_v63 = vpack.c.bf16 %v3168_v39, %v3168_v39 }
 0x480   :  { %1502 = vmatmul.bf16.vlgmr.msrb.gmra.mxu0 %v1493_v63  ;;  %1515 = vmatmul.bf16.vlgmr.msrb.gmra.mxu1 %v1493_v63 }
 0x481   :  { %1528 = vmatmul.bf16.vlgmr.msrb.gmra.mxu2 %v1493_v63  ;;  %1541 = vmatmul.bf16.vlgmr.msrb.gmra.mxu3 %v1493_v63 }
 0x4fd   :  { %v1503_v46 = vpop.f32.mrf.mxu0  ;;  %v1516_v50 = vpop.f32.mrf.mxu1 }
 0x4fe   :  { %v1546_v56 = vadd.f32 %v1503_v46, %v3298_v51  ;;  %v1547_v20 = vadd.f32 %v1516_v50, %v3299_v2 }
 0x500   :  { %v2110_v3 = vmul.f32 -1.442695, %v1546_v56  ;;  %v2111_v30 = vmul.f32 -1.442695, %v1547_v20  ;;  %v3192_v20 = vld [vmem:[%s3241_s1] sm:$0xff]  ;;  %s2370_s1 = smov [#allocation5]  }
 0x501   :  { %s1814_s20 = sshll.u32 %s2370_s1, 4  ;;  %s1815_s20 = int_to_ptr.vmem [resolvable:$true] %s1814_s20 }
 0x502   :  { %2282 = vpow2.f32 %v2110_v3  ;;  %v3302_v3 = vld [vmem:[#allocation21_spill] sm:$0xff] }
 0x503   :  { %2284 = vpow2.f32 %v2111_v30  ;;  %v888_v30 = vmul.f32 %v3192_v20, %v3302_v3 }
 0x504   :  { %v1529_v4 = vpop.f32.mrf.mxu2  ;;  %v1542_v10 = vpop.f32.mrf.mxu3 }
 0x505   :  { %v1548_v16 = vadd.f32 %v1529_v4, %v3300_v15  ;;  %v1505_v44 = vpop.f32.mrf.mxu0  ;;  %v1518_v36 = vpop.f32.mrf.mxu1  ;;  %v1549_v0 = vadd.f32 %v1542_v10, %v3301_v55 }
 0x506   :  { %v1790_v44 = vrot.slane %v888_v30, 4 }
 0x507   :  { %v2112_v54 = vmul.f32 -1.442695, %v1548_v16 }
 0x508   :  { %v2283_v40 = vpop.eup %2282 }
 0x509   :  { %v2285_v58 = vpop.eup %2284  ;;  %v1559_v62 = vadd.f32 1.0, %v2283_v40  ;;  %2286 = vpow2.f32 %v2112_v54 }
 0x50a   :  { %v1560_v11 = vadd.f32 1.0, %v2285_v58 }
 0x50b   :  { %2288 = vrcp.f32 %v1559_v62  ;;  %v1573_v52 = vand.u32 2147483648, %v1559_v62  ;;  %v1571_v6 = vand.u32 2147483647, %v1559_v62  ;;  %vm1567_vm4 = vweird.f32 %v1559_v62 }
 0x50c   :  { %2290 = vrcp.f32 %v1560_v11  ;;  %v1531_v43 = vpop.f32.mrf.mxu2  ;;  %v1544_v23 = vpop.f32.mrf.mxu3  ;;  %v1588_v24 = vand.u32 2147483648, %v1560_v11  ;;  %v1586_v41 = vand.u32 2147483647, %v1560_v11  ;;  %vm1582_vm5 = vweird.f32 %v1560_v11 }
 0x50d   :  { %v1574_v49 = vor.u32 1.1754944e-38, %v1573_v52  ;;  %vm1572_vm8 = vcmp.eq.f32.partialorder %v1571_v6, 8.507059e+37 }
 0x50e   :  { %v1589_v59 = vor.u32 1.1754944e-38, %v1588_v24  ;;  %vm1587_vm9 = vcmp.eq.f32.partialorder %v1586_v41, 8.507059e+37 }
 0x50f   :  { %v2287_v14 = vpop.eup %2286 }
 0x510   :  { %v1561_v45 = vadd.f32 1.0, %v2287_v14 }
 0x511   :  { %v2289_v18 = vpop.eup %2288 }
 0x512   :  { %v2291_v28 = vpop.eup %2290  ;;  %v1563_v57 = vmul.f32 %v2289_v18, %v1559_v62  ;;  %2292 = vrcp.f32 %v1561_v45  ;;  %vm1568_vm2 = vweird.f32 %v2289_v18  ;;  %v1603_v12 = vand.u32 2147483648, %v1561_v45 }
 0x513   :  { %v1578_v17 = vmul.f32 %v2291_v28, %v1560_v11  ;;  %2294 = vtanh.f32 %v1549_v0  ;;  %vm1583_vm3 = vweird.f32 %v2291_v28  ;;  %vm1569_vm6 = vmor %vm1567_vm4, %vm1568_vm2  ;;  %vm1597_vm11 = vweird.f32 %v1561_v45 }
 0x514   :  { %v1564_v31 = vsub.f32 1.0, %v1563_v57  ;;  %vm1584_vm7 = vmor %vm1582_vm5, %vm1583_vm3  ;;  %v1601_v34 = vand.u32 2147483647, %v1561_v45  ;;  %v1604_v50 = vor.u32 1.1754944e-38, %v1603_v12 }
 0x515   :  { %v1579_v25 = vsub.f32 1.0, %v1578_v17 }
 0x516   :  { %v1565_v38 = vmul.f32 %v2289_v18, %v1564_v31  ;;  %vm1602_vm13 = vcmp.eq.f32.partialorder %v1601_v34, 8.507059e+37 }
 0x517   :  { %v1580_v37 = vmul.f32 %v2291_v28, %v1579_v25 }
 0x518   :  { %v2293_v48 = vpop.eup %2292  ;;  %v1566_v27 = vadd.f32 %v2289_v18, %v1565_v38 }
 0x519   :  { %v1593_v47 = vmul.f32 %v2293_v48, %v1561_v45  ;;  %v1581_v53 = vadd.f32 %v2291_v28, %v1580_v37  ;;  %v2295_v1 = vpop.eup %2294  ;;  %vm1598_vm10 = vweird.f32 %v2293_v48 }
 0x51a   :  { %v1570_v61 = vsel %vm1569_vm6, %v2289_v18, %v1566_v27  ;;  %vm1599_vm12 = vmor %vm1597_vm11, %vm1598_vm10 }
 0x51b   :  { %v1594_v7 = vsub.f32 1.0, %v1593_v47  ;;  %v1575_v8 = vsel %vm1572_vm8, %v1574_v49, %v1570_v61  ;;  %v1585_v9 = vsel %vm1584_vm7, %v2291_v28, %v1581_v53 }
 0x51c   :  { %v1590_v13 = vsel %vm1587_vm9, %v1589_v59, %v1585_v9  ;;  %v1609_v19 = vmul.f32 %v2295_v1, %v1575_v8 }
 0x51d   :  { %v1595_v21 = vmul.f32 %v2293_v48, %v1594_v7  ;;  %v1608_v22 = vmul.f32 %v1590_v13, %v1466_v60 }
 0x51f   :  { %v1610_v26 = vadd.f32 %v1609_v19, %v1608_v22  ;;  %v1596_v5 = vadd.f32 %v2293_v48, %v1595_v21 }
 0x521   :  { %2296 = vtanh.f32 %v1610_v26  ;;  %v1613_v33 = vsub.f32 %v1610_v26, %v1466_v60  ;;  %v1600_v46 = vsel %vm1599_vm12, %v2293_v48, %v1596_v5 }
 0x522   :  { %v1605_v10 = vsel %vm1602_vm13, %v1604_v50, %v1600_v46 }
 0x523   :  { %v1614_v63 = vmul.f32 %v1613_v33, %v3184_v32 }
 0x525   :  { %v3187_v56 = vadd.f32 %v1614_v63, %v1466_v60 }
 0x527   :  { %v2297_v4 = vpop.eup %2296  ;;  %v1748_v46 = vrot.slane %v3187_v56, 4  ;;  %v3303_v56 = vld [vmem:[#allocation20_spill] sm:$0xff] }
 0x528   :  { %v1612_v16 = vmul.f32 %v2297_v4, %v1605_v10 }
 0x52a   :  { %v1616_v36 = vsub.f32 %v1612_v16, %v3168_v39  ;;  %v1619_v54 = vmul.f32 %v1612_v16, %v3184_v32 }
 0x52c   :  { %v1617_v40 = vmul.f32 %v1616_v36, %v3184_v32  ;;  %v1770_v58 = vrot.slane %v1619_v54, 4  ;;  %v3201_v62 = vsel %vm392_vm0, %v1619_v54, %v1790_v44 }
 0x52e   :  { %v3204_v11 = vadd.f32 %v1617_v40, %v3168_v39  ;;  %v3208_v43 = vsel %vm392_vm0, %v888_v30, %v1770_v58 }
 0x530   :  { %v1620_v23 = vpack.c.bf16 %v3204_v11, %v3204_v11 }
 0x532   :  { %1629 = vmatmul.bf16.vlgmr.msra.gmra.mxu0 %v1620_v23  ;;  %1642 = vmatmul.bf16.vlgmr.msra.gmra.mxu1 %v1620_v23 }
 0x533   :  { %1655 = vmatmul.bf16.vlgmr.msra.gmra.mxu2 %v1620_v23  ;;  %1668 = vmatmul.bf16.vlgmr.msra.gmra.mxu3 %v1620_v23 }
 0x5af   :  { %v1630_v14 = vpop.f32.mrf.mxu0  ;;  %v1643_v45 = vpop.f32.mrf.mxu1 }
 0x5b0   :  { %v1677_v18 = vrot.slane %v1630_v14, 4  ;;  %v1678_v35 = vrot.slane %v1643_v45, 4 }
 0x5b2   :  { %v1685_v0 = vadd.f32 %v1677_v18, %v3298_v51  ;;  %v1686_v39 = vadd.f32 %v1678_v35, %v3299_v2  ;;  %v737_v18 = vmul.f32 %v3192_v20, %v3303_v56 }
 0x5b4   :  { %v2113_v28 = vmul.f32 -1.442695, %v1685_v0  ;;  %v2114_v57 = vmul.f32 -1.442695, %v1686_v39 }
 0x5b6   :  { %2298 = vpow2.f32 %v2113_v28  ;;  %v1656_v17 = vpop.f32.mrf.mxu2  ;;  %v1669_v31 = vpop.f32.mrf.mxu3  ;;  %v1756_v28 = vrot.slane %v3204_v11, 4 }
 0x5b7   :  { %2300 = vpow2.f32 %v2114_v57  ;;  %v1679_v29 = vrot.slane %v1656_v17, 4  ;;  %v1632_v25 = vpop.f32.mrf.mxu0  ;;  %v1645_v52 = vpop.f32.mrf.mxu1  ;;  %v1680_v2 = vrot.slane %v1669_v31, 4  ;;  %v1794_v57 = vrot.slane %v737_v18, 4 }
 0x5b9   :  { %v1687_v24 = vadd.f32 %v1679_v29, %v3300_v15  ;;  %v1688_v59 = vadd.f32 %v1680_v2, %v3301_v55 }
 0x5bb   :  { %v2115_v38 = vmul.f32 -1.442695, %v1687_v24 }
 0x5bc   :  { %v2299_v6 = vpop.eup %2298 }
 0x5bd   :  { %v2301_v37 = vpop.eup %2300  ;;  %v1698_v41 = vadd.f32 1.0, %v2299_v6  ;;  %2302 = vpow2.f32 %v2115_v38 }
 0x5be   :  { %v1699_v48 = vadd.f32 1.0, %v2301_v37  ;;  %v1658_v51 = vpop.f32.mrf.mxu2  ;;  %v1671_v27 = vpop.f32.mrf.mxu3 }
 0x5bf   :  { %2304 = vrcp.f32 %v1698_v41  ;;  %v1712_v8 = vand.u32 2147483648, %v1698_v41  ;;  %v1710_v19 = vand.u32 2147483647, %v1698_v41  ;;  %vm1706_vm2 = vweird.f32 %v1698_v41 }
 0x5c0   :  { %2306 = vrcp.f32 %v1699_v48  ;;  %v1727_v9 = vand.u32 2147483648, %v1699_v48  ;;  %v1725_v22 = vand.u32 2147483647, %v1699_v48  ;;  %vm1721_vm3 = vweird.f32 %v1699_v48 }
 0x5c1   :  { %v1713_v12 = vor.u32 1.1754944e-38, %v1712_v8  ;;  %vm1711_vm6 = vcmp.eq.f32.partialorder %v1710_v19, 8.507059e+37 }
 0x5c2   :  { %v1728_v34 = vor.u32 1.1754944e-38, %v1727_v9  ;;  %vm1726_vm7 = vcmp.eq.f32.partialorder %v1725_v22, 8.507059e+37 }
 0x5c3   :  { %v2303_v47 = vpop.eup %2302 }
 0x5c4   :  { %v1700_v49 = vadd.f32 1.0, %v2303_v47 }
 0x5c5   :  { %v2305_v53 = vpop.eup %2304 }
 0x5c6   :  { %v2307_v60 = vpop.eup %2306  ;;  %v1702_v61 = vmul.f32 %v2305_v53, %v1698_v41  ;;  %2308 = vrcp.f32 %v1700_v49  ;;  %vm1707_vm14 = vweird.f32 %v2305_v53  ;;  %v1742_v58 = vand.u32 2147483648, %v1700_v49 }
 0x5c7   :  { %v1717_v15 = vmul.f32 %v2307_v60, %v1699_v48  ;;  %2310 = vtanh.f32 %v1688_v59  ;;  %vm1722_vm15 = vweird.f32 %v2307_v60  ;;  %vm1708_vm4 = vmor %vm1706_vm2, %vm1707_vm14  ;;  %vm1736_vm9 = vweird.f32 %v1700_v49 }
 0x5c8   :  { %v1703_v1 = vsub.f32 1.0, %v1702_v61  ;;  %vm1723_vm5 = vmor %vm1721_vm3, %vm1722_vm15  ;;  %v1740_v23 = vand.u32 2147483647, %v1700_v49  ;;  %v1743_v45 = vor.u32 1.1754944e-38, %v1742_v58 }
 0x5c9   :  { %v1718_v7 = vsub.f32 1.0, %v1717_v15 }
 0x5ca   :  { %v1704_v13 = vmul.f32 %v2305_v53, %v1703_v1  ;;  %vm1741_vm11 = vcmp.eq.f32.partialorder %v1740_v23, 8.507059e+37 }
 0x5cb   :  { %v1719_v21 = vmul.f32 %v2307_v60, %v1718_v7 }
 0x5cc   :  { %v2309_v26 = vpop.eup %2308  ;;  %v1705_v5 = vadd.f32 %v2305_v53, %v1704_v13 }
 0x5cd   :  { %v1732_v55 = vmul.f32 %v2309_v26, %v1700_v49  ;;  %v1720_v33 = vadd.f32 %v2307_v60, %v1719_v21  ;;  %v2311_v50 = vpop.eup %2310  ;;  %vm1737_vm8 = vweird.f32 %v2309_v26 }
 0x5ce   :  { %v1709_v63 = vsel %vm1708_vm4, %v2305_v53, %v1705_v5  ;;  %vm1738_vm10 = vmor %vm1736_vm9, %vm1737_vm8 }
 0x5cf   :  { %v1733_v3 = vsub.f32 1.0, %v1732_v55  ;;  %v1714_v30 = vsel %vm1711_vm6, %v1713_v12, %v1709_v63  ;;  %v1724_v4 = vsel %vm1723_vm5, %v2307_v60, %v1720_v33 }
 0x5d0   :  { %v1729_v10 = vsel %vm1726_vm7, %v1728_v34, %v1724_v4  ;;  %v1751_v16 = vmul.f32 %v2311_v50, %v1714_v30 }
 0x5d1   :  { %v1734_v44 = vmul.f32 %v2309_v26, %v1733_v3  ;;  %v1750_v36 = vmul.f32 %v1748_v46, %v1729_v10 }
 0x5d3   :  { %v1752_v54 = vadd.f32 %v1751_v16, %v1750_v36  ;;  %v1735_v40 = vadd.f32 %v2309_v26, %v1734_v44 }
 0x5d5   :  { %2312 = vtanh.f32 %v1752_v54  ;;  %v1739_v14 = vsel %vm1738_vm10, %v2309_v26, %v1735_v40 }
 0x5d6   :  { %v1744_v0 = vsel %vm1741_vm11, %v1743_v45, %v1739_v14 }
 0x5db   :  { %v2313_v35 = vpop.eup %2312 }
 0x5dc   :  { %v1754_v39 = vmul.f32 %v2313_v35, %v1744_v0 }
 0x5de   :  { %v1758_v17 = vsub.f32 %v1754_v39, %v1756_v28  ;;  %v1764_v31 = vmul.f32 %v1754_v39, %v3184_v32 }
 0x5e0   :  { %v1759_v29 = vmul.f32 %v1758_v17, %v3184_v32  ;;  %v1766_v25 = vrot.slane %v1764_v31, 4  ;;  %v1796_v52 = vsel %vm392_vm0, %v1764_v31, %v1794_v57 }
 0x5e1   :  { %v1801_v24 = vsel %vm1797_vm1, %v3201_v62, %v1796_v52 }
 0x5e2   :  { %v1761_v20 = vrot.slane %v1759_v29, 4  ;;  %v1768_v38 = vsel %vm392_vm0, %v737_v18, %v1766_v25  ;;  %1805 = vst [vmem:[%s3247_s7 + $0x18] sm:$0xff] %v1801_v24 }
 0x5e3   :  { %v1798_v32 = vsel %vm1797_vm1, %v1768_v38, %v3208_v43 }
 0x5e4   :  { %v1763_v6 = vadd.f32 %v1761_v20, %v3204_v11  ;;  %1802 = vst [vmem:[%s3247_s7] sm:$0xff] %v1798_v32 }
 0x5e6   :  { %1806 = vst [vmem:[#allocation5] sm:$0xf] %v1763_v6 }
 0x5e7   :  { %1819 = dma.vmem_to_hbm [thread:$0]  %s1815_s20, 64, %s1817_s23, [#allocation4]  }
 0x5e8   :  { %2365 = dma.done.wait [#allocation4], 64  }
 0x5e9   :  { %2366 = vsyncadd [#allocation4], 4294967232 }
 0x5ea   :  { %1826 = vsyncpa [#allocation3], 1 }
 0x5eb   :  { %1827 = vsyncpa [#allocation4], 1 }

</bundles_post_ra>
